<compile_context>
chip_gen: v7x
topology: tpu7x:2x2x1
jax: 0.10.0
libtpu: 0.0.40
codegen_flags: <defaults>
</compile_context>

<pallas_src>
import functools

import jax
import jax.numpy as jnp
import numpy as np
from jax.experimental import pallas as pl
from jax.experimental.pallas import tpu as pltpu

MEAN = 0.0
STD = 1.0


def decoder_kernel(x_ref, latent_ref,
                   wih0_ref, b0_ref, w01_ref, whh1_ref, b1_ref,
                   wl_ref, bl_ref,
                   w1a_ref, w1b_ref, bm1_ref,
                   w2_ref, bm2_ref,
                   out_ref):
    B, T = x_ref.shape               # batch block, condition window
    H = whh1_ref.shape[0]            # hidden size

    def dot(a, b):
        return jnp.dot(a, b, preferred_element_type=jnp.float32)

    # ---- loop-independent work, hoisted ahead of the serial recurrence -----
    # latent2 = Linear(L, H)(latent); its contribution to the first MLP layer
    # (latent2 @ W1[:, H:].T + bm1) is also precomputed so only the latent1
    # half remains after the recurrence finishes.
    latent2 = dot(latent_ref[...], wl_ref[...]) + bl_ref[...]           # (B, H)
    hidden_from_latent2 = dot(latent2, w1b_ref[...]) + bm1_ref[...]     # (B, H)

    # Layer-0 input projection (+ fused bias) for every timestep, precomputed
    # once.  input_size == 1, so it is just a scalar-column times weight-row
    # broadcast -- no one-hot select / cross-lane reduce per step.
    xb = (x_ref[...] - MEAN) / STD                                      # (B, T)
    wih0 = wih0_ref[...]                                                # (1, 4H)
    b0 = b0_ref[...]                                                    # (1, 4H)
    xw0b = [xb[:, s:s + 1] * wih0 + b0 for s in range(T)]               # T x (B, 4H)

    w01 = w01_ref[...]        # (H, 8H) = [Whh0.T | Wih1.T]
    whh1 = whh1_ref[...]      # (H, 4H) = Whh1.T
    b1 = b1_ref[...]          # (1, 4H) = b_ih1 + b_hh1

    def lstm_cell(gates, c_prev):
        # PyTorch gate order (i, f, g, o).  One sigmoid over the full 4H block
        # (single EUP push) instead of three H-wide sigmoids.
        sig = jax.nn.sigmoid(gates)
        g = jnp.tanh(gates[:, 2 * H:3 * H])
        c = sig[:, H:2 * H] * c_prev + sig[:, :H] * g
        h = sig[:, 3 * H:] * jnp.tanh(c)
        return h, c

    zeros = jnp.zeros((B, H), jnp.float32)
    # Layer 0, time 0: h0(-1) = c0(-1) = 0, so no recurrent matmul is needed.
    h0, c0 = lstm_cell(xw0b[0], zeros)
    h1, c1 = zeros, zeros

    # Skewed (wavefront) recurrence, fully unrolled: at iteration s we advance
    # layer 0 to time s and layer 1 to time s-1.  Both read only h0(s-1) and
    # h1(s-2), so the single fused matmul h0(s-1) @ [Whh0 | Wih1] feeds both
    # layers and the two cell updates are independent.
    for s in range(1, T):
        m = dot(h0, w01)                                                # (B, 8H)
        gates1 = m[:, 4 * H:] + dot(h1, whh1) + b1                      # layer 1, time s-1
        gates0 = xw0b[s] + m[:, :4 * H]                                 # layer 0, time s
        h1, c1 = lstm_cell(gates1, c1)
        h0, c0 = lstm_cell(gates0, c0)

    # Epilogue: layer 1 at time T-1 (uses the final h0).
    gates1 = dot(h0, w01[:, 4 * H:]) + dot(h1, whh1) + b1
    h1, _ = lstm_cell(gates1, c1)

    latent1 = h1                                                        # (B, H)
    # model: Linear(2H, H) -> ReLU -> Linear(H, 1), with the concat expressed
    # as the identical split matmul (latent2 half already hoisted above).
    hidden = jnp.maximum(dot(latent1, w1a_ref[...]) + hidden_from_latent2, 0.0)
    out = dot(hidden, w2_ref[...]) + bm2_ref[...]                       # (B, 1)
    out_ref[...] = out * STD + MEAN


WEIGHT_KEYS = ("wih0_t", "b0", "w01", "whh1_t", "b1", "wl_t", "bl",
               "w1a_t", "w1b_t", "bm1", "w2_t", "bm2")


@functools.partial(jax.jit, static_argnames=("batch_block",))
def decoder_forward(latent, x, params, batch_block=None):
    """x: (B, T) condition window, latent: (B, L). Returns (B, 1)."""
    B, T = x.shape
    L = latent.shape[1]
    bb = B if batch_block is None else batch_block
    assert B % bb == 0 and bb % min(B, 8) == 0, "batch block must tile the batch"

    weights = [params[k] for k in WEIGHT_KEYS]
    grid = (B // bb,)
    in_specs = ([pl.BlockSpec((bb, T), lambda i: (i, 0)),       # x block (batch on sublanes)
                 pl.BlockSpec((bb, L), lambda i: (i, 0))]       # latent block
                + [pl.BlockSpec(w.shape, lambda i: (0, 0)) for w in weights])
    out_specs = pl.BlockSpec((bb, 1), lambda i: (i, 0))

    return pl.pallas_call(
        decoder_kernel,
        out_shape=jax.ShapeDtypeStruct((B, 1), jnp.float32),
        grid=grid,
        in_specs=in_specs,
        out_specs=out_specs,
        compiler_params=pltpu.CompilerParams(
            # batch blocks are independent -> shard across TensorCores
            dimension_semantics=("parallel",)),
    )(x, latent, *weights)


def init_params(key, hidden_size, latent_length):
    """Raw parameters with PyTorch nn.LSTM / nn.Linear shapes and init ranges."""
    H, L = hidden_size, latent_length
    ks = jax.random.split(key, 14)
    u = lambda k, shape, s: jax.random.uniform(k, shape, jnp.float32, -s, s)
    sH = 1.0 / np.sqrt(H)
    sL = 1.0 / np.sqrt(L)
    s2H = 1.0 / np.sqrt(2 * H)
    return dict(
        # LSTM layer 0 (input_size=1) and layer 1 (input_size=H)
        w_ih0=u(ks[0], (4 * H, 1), sH), w_hh0=u(ks[1], (4 * H, H), sH),
        b_ih0=u(ks[2], (4 * H,), sH), b_hh0=u(ks[3], (4 * H,), sH),
        w_ih1=u(ks[4], (4 * H, H), sH), w_hh1=u(ks[5], (4 * H, H), sH),
        b_ih1=u(ks[6], (4 * H,), sH), b_hh1=u(ks[7], (4 * H,), sH),
        # latent_to_latent: Linear(L, H)
        wl=u(ks[8], (H, L), sL), bl=u(ks[9], (H,), sL),
        # model: Linear(2H, H) -> ReLU -> Linear(H, 1)
        w1=u(ks[10], (H, 2 * H), s2H), bm1=u(ks[11], (H,), s2H),
        w2=u(ks[12], (1, H), sH), bm2=u(ks[13], (1,), sH),
    )


def pack_params(raw):
    """Pre-transpose / pre-fuse weights into the layout the kernel consumes."""
    H = raw["w_hh0"].shape[1]
    return dict(
        wih0_t=raw["w_ih0"].T,                                          # (1, 4H)
        b0=(raw["b_ih0"] + raw["b_hh0"])[None, :],                      # (1, 4H)
        w01=jnp.concatenate([raw["w_hh0"].T, raw["w_ih1"].T], axis=1),  # (H, 8H)
        whh1_t=raw["w_hh1"].T,                                          # (H, 4H)
        b1=(raw["b_ih1"] + raw["b_hh1"])[None, :],                      # (1, 4H)
        wl_t=raw["wl"].T,                                               # (L, H)
        bl=raw["bl"][None, :],                                          # (1, H)
        w1a_t=raw["w1"][:, :H].T,                                       # (H, H) acts on latent1
        w1b_t=raw["w1"][:, H:].T,                                       # (H, H) acts on latent2
        bm1=raw["bm1"][None, :],                                        # (1, H)
        w2_t=raw["w2"].T,                                               # (H, 1)
        bm2=raw["bm2"][None, :],                                        # (1, 1)
    )


def reference_forward(latent, x, raw):
    """Pure-JAX reference mirroring the PyTorch forward exactly (raw weights)."""
    H = raw["w_hh0"].shape[1]
    B, T = x.shape
    hp = jax.lax.Precision.HIGHEST
    mm = functools.partial(jnp.dot, precision=hp)
    xb = (x - MEAN) / STD

    def cell(gates, c):
        i = jax.nn.sigmoid(gates[:, 0 * H:1 * H])
        f = jax.nn.sigmoid(gates[:, 1 * H:2 * H])
        g = jnp.tanh(gates[:, 2 * H:3 * H])
        o = jax.nn.sigmoid(gates[:, 3 * H:4 * H])
        c = f * c + i * g
        return o * jnp.tanh(c), c

    h0 = c0 = h1 = c1 = jnp.zeros((B, H), jnp.float32)
    for t in range(T):
        x_t = xb[:, t:t + 1]                                            # (B, 1)
        g0 = mm(x_t, raw["w_ih0"].T) + mm(h0, raw["w_hh0"].T) + raw["b_ih0"] + raw["b_hh0"]
        h0, c0 = cell(g0, c0)
        g1 = mm(h0, raw["w_ih1"].T) + mm(h1, raw["w_hh1"].T) + raw["b_ih1"] + raw["b_hh1"]
        h1, c1 = cell(g1, c1)

    latent1 = h1
    latent2 = mm(latent, raw["wl"].T) + raw["bl"]
    cat = jnp.concatenate([latent1, latent2], axis=1)
    hidden = jnp.maximum(mm(cat, raw["w1"].T) + raw["bm1"], 0.0)
    out = mm(hidden, raw["w2"].T) + raw["bm2"]
    return out * STD + MEAN


if __name__ == "__main__":
    B = 8                 # batch (multiple of 8 -> full f32 sublane tile)
    condition_size = 8    # T
    hidden_size = 32      # H
    latent_length = 16    # L

    key = jax.random.PRNGKey(0)
    k_p, k_x, k_l = jax.random.split(key, 3)
    raw = init_params(k_p, hidden_size, latent_length)
    params = pack_params(raw)

    x = jax.random.normal(k_x, (B, condition_size), jnp.float32)
    latent = jax.random.normal(k_l, (B, latent_length), jnp.float32)

    out = decoder_forward(latent, x, params)
    out = jax.block_until_ready(out)

    ref = reference_forward(latent, x, raw)
    assert out.shape == (B, 1)
    # Tolerance covers MXU f32 matmul rounding vs. the HIGHEST-precision XLA
    # reference; a real bug (wrong recurrence / gate order) produces O(1e-1+)
    # errors, so this check remains meaningful.
    np.testing.assert_allclose(np.asarray(out), np.asarray(ref), rtol=1e-3, atol=1e-3)

    print("KERNEL_OK")
</pallas_src>

<mosaic_0001>
module attributes {stable_mosaic.version = 11 : i64} {
  func.func @decoder_kernel(%arg0: i32, %arg1: memref<8x8xf32, #tpu.memory_space<vmem>>, %arg2: memref<8x16xf32, #tpu.memory_space<vmem>>, %arg3: memref<1x128xf32, #tpu.memory_space<vmem>>, %arg4: memref<1x128xf32, #tpu.memory_space<vmem>>, %arg5: memref<32x256xf32, #tpu.memory_space<vmem>>, %arg6: memref<32x128xf32, #tpu.memory_space<vmem>>, %arg7: memref<1x128xf32, #tpu.memory_space<vmem>>, %arg8: memref<16x32xf32, #tpu.memory_space<vmem>>, %arg9: memref<1x32xf32, #tpu.memory_space<vmem>>, %arg10: memref<32x32xf32, #tpu.memory_space<vmem>>, %arg11: memref<32x32xf32, #tpu.memory_space<vmem>>, %arg12: memref<1x32xf32, #tpu.memory_space<vmem>>, %arg13: memref<32x1xf32, #tpu.memory_space<vmem>>, %arg14: memref<1x1xf32, #tpu.memory_space<vmem>>, %arg15: memref<8x1xf32, #tpu.memory_space<vmem>>) attributes {dimension_semantics = [#tpu.dimension_semantics<parallel>], iteration_bounds = array<i64: 1>, scalar_prefetch = 0 : i64, scratch_operands = 0 : i64, tpu.core_type = #tpu.core_type<tc>, window_params = [{transform_indices = @transform_0, window_bounds = array<i64: 8, 8>}, {transform_indices = @transform_1, window_bounds = array<i64: 8, 16>}, {pipeline_mode = #tpu.pipeline_mode<synchronous>, transform_indices = @transform_2, window_bounds = array<i64: 1, 128>}, {pipeline_mode = #tpu.pipeline_mode<synchronous>, transform_indices = @transform_3, window_bounds = array<i64: 1, 128>}, {pipeline_mode = #tpu.pipeline_mode<synchronous>, transform_indices = @transform_4, window_bounds = array<i64: 32, 256>}, {pipeline_mode = #tpu.pipeline_mode<synchronous>, transform_indices = @transform_5, window_bounds = array<i64: 32, 128>}, {pipeline_mode = #tpu.pipeline_mode<synchronous>, transform_indices = @transform_6, window_bounds = array<i64: 1, 128>}, {pipeline_mode = #tpu.pipeline_mode<synchronous>, transform_indices = @transform_7, window_bounds = array<i64: 16, 32>}, {pipeline_mode = #tpu.pipeline_mode<synchronous>, transform_indices = @transform_8, window_bounds = array<i64: 1, 32>}, {pipeline_mode = #tpu.pipeline_mode<synchronous>, transform_indices = @transform_9, window_bounds = array<i64: 32, 32>}, {pipeline_mode = #tpu.pipeline_mode<synchronous>, transform_indices = @transform_10, window_bounds = array<i64: 32, 32>}, {pipeline_mode = #tpu.pipeline_mode<synchronous>, transform_indices = @transform_11, window_bounds = array<i64: 1, 32>}, {pipeline_mode = #tpu.pipeline_mode<synchronous>, transform_indices = @transform_12, window_bounds = array<i64: 32, 1>}, {pipeline_mode = #tpu.pipeline_mode<synchronous>, transform_indices = @transform_13, window_bounds = array<i64: 1, 1>}, {transform_indices = @transform_14, window_bounds = array<i64: 8, 1>}]} {
    %c0 = arith.constant 0 : index
    %c0_0 = arith.constant 0 : index
    %0 = vector.load %arg2[%c0, %c0_0] : memref<8x16xf32, #tpu.memory_space<vmem>>, vector<8x16xf32>
    %c0_1 = arith.constant 0 : index
    %c0_2 = arith.constant 0 : index
    %1 = vector.load %arg8[%c0_1, %c0_2] : memref<16x32xf32, #tpu.memory_space<vmem>>, vector<16x32xf32>
    %cst = arith.constant dense<0.000000e+00> : vector<8x32xf32>
    %2 = tpu.matmul %0, %1, %cst {dimension_numbers = #tpu.dot_dimension_numbers<[1], [0], [0], [1], [0, 0, 1, 1], [], []>} : vector<8x16xf32>, vector<16x32xf32>, vector<8x32xf32> -> vector<8x32xf32>
    %c0_3 = arith.constant 0 : index
    %c0_4 = arith.constant 0 : index
    %3 = vector.load %arg9[%c0_3, %c0_4] : memref<1x32xf32, #tpu.memory_space<vmem>>, vector<1x32xf32>
    %4 = vector.broadcast %3 : vector<1x32xf32> to vector<8x32xf32>
    %5 = arith.addf %2, %4 : vector<8x32xf32>
    %c0_5 = arith.constant 0 : index
    %c0_6 = arith.constant 0 : index
    %6 = vector.load %arg11[%c0_5, %c0_6] : memref<32x32xf32, #tpu.memory_space<vmem>>, vector<32x32xf32>
    %cst_7 = arith.constant dense<0.000000e+00> : vector<8x32xf32>
    %7 = tpu.matmul %5, %6, %cst_7 {dimension_numbers = #tpu.dot_dimension_numbers<[1], [0], [0], [1], [0, 0, 1, 1], [], []>} : vector<8x32xf32>, vector<32x32xf32>, vector<8x32xf32> -> vector<8x32xf32>
    %c0_8 = arith.constant 0 : index
    %c0_9 = arith.constant 0 : index
    %8 = vector.load %arg12[%c0_8, %c0_9] : memref<1x32xf32, #tpu.memory_space<vmem>>, vector<1x32xf32>
    %9 = vector.broadcast %8 : vector<1x32xf32> to vector<8x32xf32>
    %10 = arith.addf %7, %9 : vector<8x32xf32>
    %c0_10 = arith.constant 0 : index
    %c0_11 = arith.constant 0 : index
    %11 = vector.load %arg1[%c0_10, %c0_11] : memref<8x8xf32, #tpu.memory_space<vmem>>, vector<8x8xf32>
    %cst_12 = arith.constant 0.000000e+00 : f32
    %12 = vector.broadcast %cst_12 : f32 to vector<8x8xf32>
    %13 = arith.subf %11, %12 : vector<8x8xf32>
    %cst_13 = arith.constant 1.000000e+00 : f32
    %14 = vector.broadcast %cst_13 : f32 to vector<8x8xf32>
    %15 = arith.divf %13, %14 : vector<8x8xf32>
    %c0_14 = arith.constant 0 : index
    %c0_15 = arith.constant 0 : index
    %16 = vector.load %arg3[%c0_14, %c0_15] : memref<1x128xf32, #tpu.memory_space<vmem>>, vector<1x128xf32>
    %c0_16 = arith.constant 0 : index
    %c0_17 = arith.constant 0 : index
    %17 = vector.load %arg4[%c0_16, %c0_17] : memref<1x128xf32, #tpu.memory_space<vmem>>, vector<1x128xf32>
    %18 = vector.extract_strided_slice %15 {offsets = [0, 0], sizes = [8, 1], strides = [1, 1]} : vector<8x8xf32> to vector<8x1xf32>
    %19 = vector.broadcast %18 : vector<8x1xf32> to vector<8x128xf32>
    %20 = vector.broadcast %16 : vector<1x128xf32> to vector<8x128xf32>
    %21 = arith.mulf %19, %20 : vector<8x128xf32>
    %22 = vector.broadcast %17 : vector<1x128xf32> to vector<8x128xf32>
    %23 = arith.addf %21, %22 : vector<8x128xf32>
    %24 = vector.extract_strided_slice %15 {offsets = [0, 1], sizes = [8, 1], strides = [1, 1]} : vector<8x8xf32> to vector<8x1xf32>
    %25 = vector.broadcast %24 : vector<8x1xf32> to vector<8x128xf32>
    %26 = vector.broadcast %16 : vector<1x128xf32> to vector<8x128xf32>
    %27 = arith.mulf %25, %26 : vector<8x128xf32>
    %28 = vector.broadcast %17 : vector<1x128xf32> to vector<8x128xf32>
    %29 = arith.addf %27, %28 : vector<8x128xf32>
    %30 = vector.extract_strided_slice %15 {offsets = [0, 2], sizes = [8, 1], strides = [1, 1]} : vector<8x8xf32> to vector<8x1xf32>
    %31 = vector.broadcast %30 : vector<8x1xf32> to vector<8x128xf32>
    %32 = vector.broadcast %16 : vector<1x128xf32> to vector<8x128xf32>
    %33 = arith.mulf %31, %32 : vector<8x128xf32>
    %34 = vector.broadcast %17 : vector<1x128xf32> to vector<8x128xf32>
    %35 = arith.addf %33, %34 : vector<8x128xf32>
    %36 = vector.extract_strided_slice %15 {offsets = [0, 3], sizes = [8, 1], strides = [1, 1]} : vector<8x8xf32> to vector<8x1xf32>
    %37 = vector.broadcast %36 : vector<8x1xf32> to vector<8x128xf32>
    %38 = vector.broadcast %16 : vector<1x128xf32> to vector<8x128xf32>
    %39 = arith.mulf %37, %38 : vector<8x128xf32>
    %40 = vector.broadcast %17 : vector<1x128xf32> to vector<8x128xf32>
    %41 = arith.addf %39, %40 : vector<8x128xf32>
    %42 = vector.extract_strided_slice %15 {offsets = [0, 4], sizes = [8, 1], strides = [1, 1]} : vector<8x8xf32> to vector<8x1xf32>
    %43 = vector.broadcast %42 : vector<8x1xf32> to vector<8x128xf32>
    %44 = vector.broadcast %16 : vector<1x128xf32> to vector<8x128xf32>
    %45 = arith.mulf %43, %44 : vector<8x128xf32>
    %46 = vector.broadcast %17 : vector<1x128xf32> to vector<8x128xf32>
    %47 = arith.addf %45, %46 : vector<8x128xf32>
    %48 = vector.extract_strided_slice %15 {offsets = [0, 5], sizes = [8, 1], strides = [1, 1]} : vector<8x8xf32> to vector<8x1xf32>
    %49 = vector.broadcast %48 : vector<8x1xf32> to vector<8x128xf32>
    %50 = vector.broadcast %16 : vector<1x128xf32> to vector<8x128xf32>
    %51 = arith.mulf %49, %50 : vector<8x128xf32>
    %52 = vector.broadcast %17 : vector<1x128xf32> to vector<8x128xf32>
    %53 = arith.addf %51, %52 : vector<8x128xf32>
    %54 = vector.extract_strided_slice %15 {offsets = [0, 6], sizes = [8, 1], strides = [1, 1]} : vector<8x8xf32> to vector<8x1xf32>
    %55 = vector.broadcast %54 : vector<8x1xf32> to vector<8x128xf32>
    %56 = vector.broadcast %16 : vector<1x128xf32> to vector<8x128xf32>
    %57 = arith.mulf %55, %56 : vector<8x128xf32>
    %58 = vector.broadcast %17 : vector<1x128xf32> to vector<8x128xf32>
    %59 = arith.addf %57, %58 : vector<8x128xf32>
    %60 = vector.extract_strided_slice %15 {offsets = [0, 7], sizes = [8, 1], strides = [1, 1]} : vector<8x8xf32> to vector<8x1xf32>
    %61 = vector.broadcast %60 : vector<8x1xf32> to vector<8x128xf32>
    %62 = vector.broadcast %16 : vector<1x128xf32> to vector<8x128xf32>
    %63 = arith.mulf %61, %62 : vector<8x128xf32>
    %64 = vector.broadcast %17 : vector<1x128xf32> to vector<8x128xf32>
    %65 = arith.addf %63, %64 : vector<8x128xf32>
    %c0_18 = arith.constant 0 : index
    %c0_19 = arith.constant 0 : index
    %66 = vector.load %arg5[%c0_18, %c0_19] : memref<32x256xf32, #tpu.memory_space<vmem>>, vector<32x256xf32>
    %c0_20 = arith.constant 0 : index
    %c0_21 = arith.constant 0 : index
    %67 = vector.load %arg6[%c0_20, %c0_21] : memref<32x128xf32, #tpu.memory_space<vmem>>, vector<32x128xf32>
    %c0_22 = arith.constant 0 : index
    %c0_23 = arith.constant 0 : index
    %68 = vector.load %arg7[%c0_22, %c0_23] : memref<1x128xf32, #tpu.memory_space<vmem>>, vector<1x128xf32>
    %cst_24 = arith.constant 0.000000e+00 : f32
    %69 = vector.broadcast %cst_24 : f32 to vector<8x32xf32>
    %70 = arith.negf %23 : vector<8x128xf32>
    %71 = math.exp %70 : vector<8x128xf32>
    %cst_25 = arith.constant 1.000000e+00 : f32
    %72 = vector.broadcast %cst_25 : f32 to vector<8x128xf32>
    %73 = arith.addf %72, %71 : vector<8x128xf32>
    %74 = arith.divf %72, %73 : vector<8x128xf32>
    %75 = vector.extract_strided_slice %23 {offsets = [0, 64], sizes = [8, 32], strides = [1, 1]} : vector<8x128xf32> to vector<8x32xf32>
    %76 = math.tanh %75 : vector<8x32xf32>
    %77 = vector.extract_strided_slice %74 {offsets = [0, 32], sizes = [8, 32], strides = [1, 1]} : vector<8x128xf32> to vector<8x32xf32>
    %78 = arith.mulf %77, %69 : vector<8x32xf32>
    %79 = vector.extract_strided_slice %74 {offsets = [0, 0], sizes = [8, 32], strides = [1, 1]} : vector<8x128xf32> to vector<8x32xf32>
    %80 = arith.mulf %79, %76 : vector<8x32xf32>
    %81 = arith.addf %78, %80 : vector<8x32xf32>
    %82 = vector.extract_strided_slice %74 {offsets = [0, 96], sizes = [8, 32], strides = [1, 1]} : vector<8x128xf32> to vector<8x32xf32>
    %83 = math.tanh %81 : vector<8x32xf32>
    %84 = arith.mulf %82, %83 : vector<8x32xf32>
    %cst_26 = arith.constant dense<0.000000e+00> : vector<8x256xf32>
    %85 = tpu.matmul %84, %66, %cst_26 {dimension_numbers = #tpu.dot_dimension_numbers<[1], [0], [0], [1], [0, 0, 1, 1], [], []>} : vector<8x32xf32>, vector<32x256xf32>, vector<8x256xf32> -> vector<8x256xf32>
    %86 = vector.extract_strided_slice %85 {offsets = [0, 128], sizes = [8, 128], strides = [1, 1]} : vector<8x256xf32> to vector<8x128xf32>
    %cst_27 = arith.constant dense<0.000000e+00> : vector<8x128xf32>
    %87 = tpu.matmul %69, %67, %cst_27 {dimension_numbers = #tpu.dot_dimension_numbers<[1], [0], [0], [1], [0, 0, 1, 1], [], []>} : vector<8x32xf32>, vector<32x128xf32>, vector<8x128xf32> -> vector<8x128xf32>
    %88 = arith.addf %86, %87 : vector<8x128xf32>
    %89 = vector.broadcast %68 : vector<1x128xf32> to vector<8x128xf32>
    %90 = arith.addf %88, %89 : vector<8x128xf32>
    %91 = vector.extract_strided_slice %85 {offsets = [0, 0], sizes = [8, 128], strides = [1, 1]} : vector<8x256xf32> to vector<8x128xf32>
    %92 = arith.addf %29, %91 : vector<8x128xf32>
    %93 = arith.negf %90 : vector<8x128xf32>
    %94 = math.exp %93 : vector<8x128xf32>
    %cst_28 = arith.constant 1.000000e+00 : f32
    %95 = vector.broadcast %cst_28 : f32 to vector<8x128xf32>
    %96 = arith.addf %95, %94 : vector<8x128xf32>
    %97 = arith.divf %95, %96 : vector<8x128xf32>
    %98 = vector.extract_strided_slice %90 {offsets = [0, 64], sizes = [8, 32], strides = [1, 1]} : vector<8x128xf32> to vector<8x32xf32>
    %99 = math.tanh %98 : vector<8x32xf32>
    %100 = vector.extract_strided_slice %97 {offsets = [0, 32], sizes = [8, 32], strides = [1, 1]} : vector<8x128xf32> to vector<8x32xf32>
    %101 = arith.mulf %100, %69 : vector<8x32xf32>
    %102 = vector.extract_strided_slice %97 {offsets = [0, 0], sizes = [8, 32], strides = [1, 1]} : vector<8x128xf32> to vector<8x32xf32>
    %103 = arith.mulf %102, %99 : vector<8x32xf32>
    %104 = arith.addf %101, %103 : vector<8x32xf32>
    %105 = vector.extract_strided_slice %97 {offsets = [0, 96], sizes = [8, 32], strides = [1, 1]} : vector<8x128xf32> to vector<8x32xf32>
    %106 = math.tanh %104 : vector<8x32xf32>
    %107 = arith.mulf %105, %106 : vector<8x32xf32>
    %108 = arith.negf %92 : vector<8x128xf32>
    %109 = math.exp %108 : vector<8x128xf32>
    %cst_29 = arith.constant 1.000000e+00 : f32
    %110 = vector.broadcast %cst_29 : f32 to vector<8x128xf32>
    %111 = arith.addf %110, %109 : vector<8x128xf32>
    %112 = arith.divf %110, %111 : vector<8x128xf32>
    %113 = vector.extract_strided_slice %92 {offsets = [0, 64], sizes = [8, 32], strides = [1, 1]} : vector<8x128xf32> to vector<8x32xf32>
    %114 = math.tanh %113 : vector<8x32xf32>
    %115 = vector.extract_strided_slice %112 {offsets = [0, 32], sizes = [8, 32], strides = [1, 1]} : vector<8x128xf32> to vector<8x32xf32>
    %116 = arith.mulf %115, %81 : vector<8x32xf32>
    %117 = vector.extract_strided_slice %112 {offsets = [0, 0], sizes = [8, 32], strides = [1, 1]} : vector<8x128xf32> to vector<8x32xf32>
    %118 = arith.mulf %117, %114 : vector<8x32xf32>
    %119 = arith.addf %116, %118 : vector<8x32xf32>
    %120 = vector.extract_strided_slice %112 {offsets = [0, 96], sizes = [8, 32], strides = [1, 1]} : vector<8x128xf32> to vector<8x32xf32>
    %121 = math.tanh %119 : vector<8x32xf32>
    %122 = arith.mulf %120, %121 : vector<8x32xf32>
    %cst_30 = arith.constant dense<0.000000e+00> : vector<8x256xf32>
    %123 = tpu.matmul %122, %66, %cst_30 {dimension_numbers = #tpu.dot_dimension_numbers<[1], [0], [0], [1], [0, 0, 1, 1], [], []>} : vector<8x32xf32>, vector<32x256xf32>, vector<8x256xf32> -> vector<8x256xf32>
    %124 = vector.extract_strided_slice %123 {offsets = [0, 128], sizes = [8, 128], strides = [1, 1]} : vector<8x256xf32> to vector<8x128xf32>
    %cst_31 = arith.constant dense<0.000000e+00> : vector<8x128xf32>
    %125 = tpu.matmul %107, %67, %cst_31 {dimension_numbers = #tpu.dot_dimension_numbers<[1], [0], [0], [1], [0, 0, 1, 1], [], []>} : vector<8x32xf32>, vector<32x128xf32>, vector<8x128xf32> -> vector<8x128xf32>
    %126 = arith.addf %124, %125 : vector<8x128xf32>
    %127 = vector.broadcast %68 : vector<1x128xf32> to vector<8x128xf32>
    %128 = arith.addf %126, %127 : vector<8x128xf32>
    %129 = vector.extract_strided_slice %123 {offsets = [0, 0], sizes = [8, 128], strides = [1, 1]} : vector<8x256xf32> to vector<8x128xf32>
    %130 = arith.addf %35, %129 : vector<8x128xf32>
    %131 = arith.negf %128 : vector<8x128xf32>
    %132 = math.exp %131 : vector<8x128xf32>
    %cst_32 = arith.constant 1.000000e+00 : f32
    %133 = vector.broadcast %cst_32 : f32 to vector<8x128xf32>
    %134 = arith.addf %133, %132 : vector<8x128xf32>
    %135 = arith.divf %133, %134 : vector<8x128xf32>
    %136 = vector.extract_strided_slice %128 {offsets = [0, 64], sizes = [8, 32], strides = [1, 1]} : vector<8x128xf32> to vector<8x32xf32>
    %137 = math.tanh %136 : vector<8x32xf32>
    %138 = vector.extract_strided_slice %135 {offsets = [0, 32], sizes = [8, 32], strides = [1, 1]} : vector<8x128xf32> to vector<8x32xf32>
    %139 = arith.mulf %138, %104 : vector<8x32xf32>
    %140 = vector.extract_strided_slice %135 {offsets = [0, 0], sizes = [8, 32], strides = [1, 1]} : vector<8x128xf32> to vector<8x32xf32>
    %141 = arith.mulf %140, %137 : vector<8x32xf32>
    %142 = arith.addf %139, %141 : vector<8x32xf32>
    %143 = vector.extract_strided_slice %135 {offsets = [0, 96], sizes = [8, 32], strides = [1, 1]} : vector<8x128xf32> to vector<8x32xf32>
    %144 = math.tanh %142 : vector<8x32xf32>
    %145 = arith.mulf %143, %144 : vector<8x32xf32>
    %146 = arith.negf %130 : vector<8x128xf32>
    %147 = math.exp %146 : vector<8x128xf32>
    %cst_33 = arith.constant 1.000000e+00 : f32
    %148 = vector.broadcast %cst_33 : f32 to vector<8x128xf32>
    %149 = arith.addf %148, %147 : vector<8x128xf32>
    %150 = arith.divf %148, %149 : vector<8x128xf32>
    %151 = vector.extract_strided_slice %130 {offsets = [0, 64], sizes = [8, 32], strides = [1, 1]} : vector<8x128xf32> to vector<8x32xf32>
    %152 = math.tanh %151 : vector<8x32xf32>
    %153 = vector.extract_strided_slice %150 {offsets = [0, 32], sizes = [8, 32], strides = [1, 1]} : vector<8x128xf32> to vector<8x32xf32>
    %154 = arith.mulf %153, %119 : vector<8x32xf32>
    %155 = vector.extract_strided_slice %150 {offsets = [0, 0], sizes = [8, 32], strides = [1, 1]} : vector<8x128xf32> to vector<8x32xf32>
    %156 = arith.mulf %155, %152 : vector<8x32xf32>
    %157 = arith.addf %154, %156 : vector<8x32xf32>
    %158 = vector.extract_strided_slice %150 {offsets = [0, 96], sizes = [8, 32], strides = [1, 1]} : vector<8x128xf32> to vector<8x32xf32>
    %159 = math.tanh %157 : vector<8x32xf32>
    %160 = arith.mulf %158, %159 : vector<8x32xf32>
    %cst_34 = arith.constant dense<0.000000e+00> : vector<8x256xf32>
    %161 = tpu.matmul %160, %66, %cst_34 {dimension_numbers = #tpu.dot_dimension_numbers<[1], [0], [0], [1], [0, 0, 1, 1], [], []>} : vector<8x32xf32>, vector<32x256xf32>, vector<8x256xf32> -> vector<8x256xf32>
    %162 = vector.extract_strided_slice %161 {offsets = [0, 128], sizes = [8, 128], strides = [1, 1]} : vector<8x256xf32> to vector<8x128xf32>
    %cst_35 = arith.constant dense<0.000000e+00> : vector<8x128xf32>
    %163 = tpu.matmul %145, %67, %cst_35 {dimension_numbers = #tpu.dot_dimension_numbers<[1], [0], [0], [1], [0, 0, 1, 1], [], []>} : vector<8x32xf32>, vector<32x128xf32>, vector<8x128xf32> -> vector<8x128xf32>
    %164 = arith.addf %162, %163 : vector<8x128xf32>
    %165 = vector.broadcast %68 : vector<1x128xf32> to vector<8x128xf32>
    %166 = arith.addf %164, %165 : vector<8x128xf32>
    %167 = vector.extract_strided_slice %161 {offsets = [0, 0], sizes = [8, 128], strides = [1, 1]} : vector<8x256xf32> to vector<8x128xf32>
    %168 = arith.addf %41, %167 : vector<8x128xf32>
    %169 = arith.negf %166 : vector<8x128xf32>
    %170 = math.exp %169 : vector<8x128xf32>
    %cst_36 = arith.constant 1.000000e+00 : f32
    %171 = vector.broadcast %cst_36 : f32 to vector<8x128xf32>
    %172 = arith.addf %171, %170 : vector<8x128xf32>
    %173 = arith.divf %171, %172 : vector<8x128xf32>
    %174 = vector.extract_strided_slice %166 {offsets = [0, 64], sizes = [8, 32], strides = [1, 1]} : vector<8x128xf32> to vector<8x32xf32>
    %175 = math.tanh %174 : vector<8x32xf32>
    %176 = vector.extract_strided_slice %173 {offsets = [0, 32], sizes = [8, 32], strides = [1, 1]} : vector<8x128xf32> to vector<8x32xf32>
    %177 = arith.mulf %176, %142 : vector<8x32xf32>
    %178 = vector.extract_strided_slice %173 {offsets = [0, 0], sizes = [8, 32], strides = [1, 1]} : vector<8x128xf32> to vector<8x32xf32>
    %179 = arith.mulf %178, %175 : vector<8x32xf32>
    %180 = arith.addf %177, %179 : vector<8x32xf32>
    %181 = vector.extract_strided_slice %173 {offsets = [0, 96], sizes = [8, 32], strides = [1, 1]} : vector<8x128xf32> to vector<8x32xf32>
    %182 = math.tanh %180 : vector<8x32xf32>
    %183 = arith.mulf %181, %182 : vector<8x32xf32>
    %184 = arith.negf %168 : vector<8x128xf32>
    %185 = math.exp %184 : vector<8x128xf32>
    %cst_37 = arith.constant 1.000000e+00 : f32
    %186 = vector.broadcast %cst_37 : f32 to vector<8x128xf32>
    %187 = arith.addf %186, %185 : vector<8x128xf32>
    %188 = arith.divf %186, %187 : vector<8x128xf32>
    %189 = vector.extract_strided_slice %168 {offsets = [0, 64], sizes = [8, 32], strides = [1, 1]} : vector<8x128xf32> to vector<8x32xf32>
    %190 = math.tanh %189 : vector<8x32xf32>
    %191 = vector.extract_strided_slice %188 {offsets = [0, 32], sizes = [8, 32], strides = [1, 1]} : vector<8x128xf32> to vector<8x32xf32>
    %192 = arith.mulf %191, %157 : vector<8x32xf32>
    %193 = vector.extract_strided_slice %188 {offsets = [0, 0], sizes = [8, 32], strides = [1, 1]} : vector<8x128xf32> to vector<8x32xf32>
    %194 = arith.mulf %193, %190 : vector<8x32xf32>
    %195 = arith.addf %192, %194 : vector<8x32xf32>
    %196 = vector.extract_strided_slice %188 {offsets = [0, 96], sizes = [8, 32], strides = [1, 1]} : vector<8x128xf32> to vector<8x32xf32>
    %197 = math.tanh %195 : vector<8x32xf32>
    %198 = arith.mulf %196, %197 : vector<8x32xf32>
    %cst_38 = arith.constant dense<0.000000e+00> : vector<8x256xf32>
    %199 = tpu.matmul %198, %66, %cst_38 {dimension_numbers = #tpu.dot_dimension_numbers<[1], [0], [0], [1], [0, 0, 1, 1], [], []>} : vector<8x32xf32>, vector<32x256xf32>, vector<8x256xf32> -> vector<8x256xf32>
    %200 = vector.extract_strided_slice %199 {offsets = [0, 128], sizes = [8, 128], strides = [1, 1]} : vector<8x256xf32> to vector<8x128xf32>
    %cst_39 = arith.constant dense<0.000000e+00> : vector<8x128xf32>
    %201 = tpu.matmul %183, %67, %cst_39 {dimension_numbers = #tpu.dot_dimension_numbers<[1], [0], [0], [1], [0, 0, 1, 1], [], []>} : vector<8x32xf32>, vector<32x128xf32>, vector<8x128xf32> -> vector<8x128xf32>
    %202 = arith.addf %200, %201 : vector<8x128xf32>
    %203 = vector.broadcast %68 : vector<1x128xf32> to vector<8x128xf32>
    %204 = arith.addf %202, %203 : vector<8x128xf32>
    %205 = vector.extract_strided_slice %199 {offsets = [0, 0], sizes = [8, 128], strides = [1, 1]} : vector<8x256xf32> to vector<8x128xf32>
    %206 = arith.addf %47, %205 : vector<8x128xf32>
    %207 = arith.negf %204 : vector<8x128xf32>
    %208 = math.exp %207 : vector<8x128xf32>
    %cst_40 = arith.constant 1.000000e+00 : f32
    %209 = vector.broadcast %cst_40 : f32 to vector<8x128xf32>
    %210 = arith.addf %209, %208 : vector<8x128xf32>
    %211 = arith.divf %209, %210 : vector<8x128xf32>
    %212 = vector.extract_strided_slice %204 {offsets = [0, 64], sizes = [8, 32], strides = [1, 1]} : vector<8x128xf32> to vector<8x32xf32>
    %213 = math.tanh %212 : vector<8x32xf32>
    %214 = vector.extract_strided_slice %211 {offsets = [0, 32], sizes = [8, 32], strides = [1, 1]} : vector<8x128xf32> to vector<8x32xf32>
    %215 = arith.mulf %214, %180 : vector<8x32xf32>
    %216 = vector.extract_strided_slice %211 {offsets = [0, 0], sizes = [8, 32], strides = [1, 1]} : vector<8x128xf32> to vector<8x32xf32>
    %217 = arith.mulf %216, %213 : vector<8x32xf32>
    %218 = arith.addf %215, %217 : vector<8x32xf32>
    %219 = vector.extract_strided_slice %211 {offsets = [0, 96], sizes = [8, 32], strides = [1, 1]} : vector<8x128xf32> to vector<8x32xf32>
    %220 = math.tanh %218 : vector<8x32xf32>
    %221 = arith.mulf %219, %220 : vector<8x32xf32>
    %222 = arith.negf %206 : vector<8x128xf32>
    %223 = math.exp %222 : vector<8x128xf32>
    %cst_41 = arith.constant 1.000000e+00 : f32
    %224 = vector.broadcast %cst_41 : f32 to vector<8x128xf32>
    %225 = arith.addf %224, %223 : vector<8x128xf32>
    %226 = arith.divf %224, %225 : vector<8x128xf32>
    %227 = vector.extract_strided_slice %206 {offsets = [0, 64], sizes = [8, 32], strides = [1, 1]} : vector<8x128xf32> to vector<8x32xf32>
    %228 = math.tanh %227 : vector<8x32xf32>
    %229 = vector.extract_strided_slice %226 {offsets = [0, 32], sizes = [8, 32], strides = [1, 1]} : vector<8x128xf32> to vector<8x32xf32>
    %230 = arith.mulf %229, %195 : vector<8x32xf32>
    %231 = vector.extract_strided_slice %226 {offsets = [0, 0], sizes = [8, 32], strides = [1, 1]} : vector<8x128xf32> to vector<8x32xf32>
    %232 = arith.mulf %231, %228 : vector<8x32xf32>
    %233 = arith.addf %230, %232 : vector<8x32xf32>
    %234 = vector.extract_strided_slice %226 {offsets = [0, 96], sizes = [8, 32], strides = [1, 1]} : vector<8x128xf32> to vector<8x32xf32>
    %235 = math.tanh %233 : vector<8x32xf32>
    %236 = arith.mulf %234, %235 : vector<8x32xf32>
    %cst_42 = arith.constant dense<0.000000e+00> : vector<8x256xf32>
    %237 = tpu.matmul %236, %66, %cst_42 {dimension_numbers = #tpu.dot_dimension_numbers<[1], [0], [0], [1], [0, 0, 1, 1], [], []>} : vector<8x32xf32>, vector<32x256xf32>, vector<8x256xf32> -> vector<8x256xf32>
    %238 = vector.extract_strided_slice %237 {offsets = [0, 128], sizes = [8, 128], strides = [1, 1]} : vector<8x256xf32> to vector<8x128xf32>
    %cst_43 = arith.constant dense<0.000000e+00> : vector<8x128xf32>
    %239 = tpu.matmul %221, %67, %cst_43 {dimension_numbers = #tpu.dot_dimension_numbers<[1], [0], [0], [1], [0, 0, 1, 1], [], []>} : vector<8x32xf32>, vector<32x128xf32>, vector<8x128xf32> -> vector<8x128xf32>
    %240 = arith.addf %238, %239 : vector<8x128xf32>
    %241 = vector.broadcast %68 : vector<1x128xf32> to vector<8x128xf32>
    %242 = arith.addf %240, %241 : vector<8x128xf32>
    %243 = vector.extract_strided_slice %237 {offsets = [0, 0], sizes = [8, 128], strides = [1, 1]} : vector<8x256xf32> to vector<8x128xf32>
    %244 = arith.addf %53, %243 : vector<8x128xf32>
    %245 = arith.negf %242 : vector<8x128xf32>
    %246 = math.exp %245 : vector<8x128xf32>
    %cst_44 = arith.constant 1.000000e+00 : f32
    %247 = vector.broadcast %cst_44 : f32 to vector<8x128xf32>
    %248 = arith.addf %247, %246 : vector<8x128xf32>
    %249 = arith.divf %247, %248 : vector<8x128xf32>
    %250 = vector.extract_strided_slice %242 {offsets = [0, 64], sizes = [8, 32], strides = [1, 1]} : vector<8x128xf32> to vector<8x32xf32>
    %251 = math.tanh %250 : vector<8x32xf32>
    %252 = vector.extract_strided_slice %249 {offsets = [0, 32], sizes = [8, 32], strides = [1, 1]} : vector<8x128xf32> to vector<8x32xf32>
    %253 = arith.mulf %252, %218 : vector<8x32xf32>
    %254 = vector.extract_strided_slice %249 {offsets = [0, 0], sizes = [8, 32], strides = [1, 1]} : vector<8x128xf32> to vector<8x32xf32>
    %255 = arith.mulf %254, %251 : vector<8x32xf32>
    %256 = arith.addf %253, %255 : vector<8x32xf32>
    %257 = vector.extract_strided_slice %249 {offsets = [0, 96], sizes = [8, 32], strides = [1, 1]} : vector<8x128xf32> to vector<8x32xf32>
    %258 = math.tanh %256 : vector<8x32xf32>
    %259 = arith.mulf %257, %258 : vector<8x32xf32>
    %260 = arith.negf %244 : vector<8x128xf32>
    %261 = math.exp %260 : vector<8x128xf32>
    %cst_45 = arith.constant 1.000000e+00 : f32
    %262 = vector.broadcast %cst_45 : f32 to vector<8x128xf32>
    %263 = arith.addf %262, %261 : vector<8x128xf32>
    %264 = arith.divf %262, %263 : vector<8x128xf32>
    %265 = vector.extract_strided_slice %244 {offsets = [0, 64], sizes = [8, 32], strides = [1, 1]} : vector<8x128xf32> to vector<8x32xf32>
    %266 = math.tanh %265 : vector<8x32xf32>
    %267 = vector.extract_strided_slice %264 {offsets = [0, 32], sizes = [8, 32], strides = [1, 1]} : vector<8x128xf32> to vector<8x32xf32>
    %268 = arith.mulf %267, %233 : vector<8x32xf32>
    %269 = vector.extract_strided_slice %264 {offsets = [0, 0], sizes = [8, 32], strides = [1, 1]} : vector<8x128xf32> to vector<8x32xf32>
    %270 = arith.mulf %269, %266 : vector<8x32xf32>
    %271 = arith.addf %268, %270 : vector<8x32xf32>
    %272 = vector.extract_strided_slice %264 {offsets = [0, 96], sizes = [8, 32], strides = [1, 1]} : vector<8x128xf32> to vector<8x32xf32>
    %273 = math.tanh %271 : vector<8x32xf32>
    %274 = arith.mulf %272, %273 : vector<8x32xf32>
    %cst_46 = arith.constant dense<0.000000e+00> : vector<8x256xf32>
    %275 = tpu.matmul %274, %66, %cst_46 {dimension_numbers = #tpu.dot_dimension_numbers<[1], [0], [0], [1], [0, 0, 1, 1], [], []>} : vector<8x32xf32>, vector<32x256xf32>, vector<8x256xf32> -> vector<8x256xf32>
    %276 = vector.extract_strided_slice %275 {offsets = [0, 128], sizes = [8, 128], strides = [1, 1]} : vector<8x256xf32> to vector<8x128xf32>
    %cst_47 = arith.constant dense<0.000000e+00> : vector<8x128xf32>
    %277 = tpu.matmul %259, %67, %cst_47 {dimension_numbers = #tpu.dot_dimension_numbers<[1], [0], [0], [1], [0, 0, 1, 1], [], []>} : vector<8x32xf32>, vector<32x128xf32>, vector<8x128xf32> -> vector<8x128xf32>
    %278 = arith.addf %276, %277 : vector<8x128xf32>
    %279 = vector.broadcast %68 : vector<1x128xf32> to vector<8x128xf32>
    %280 = arith.addf %278, %279 : vector<8x128xf32>
    %281 = vector.extract_strided_slice %275 {offsets = [0, 0], sizes = [8, 128], strides = [1, 1]} : vector<8x256xf32> to vector<8x128xf32>
    %282 = arith.addf %59, %281 : vector<8x128xf32>
    %283 = arith.negf %280 : vector<8x128xf32>
    %284 = math.exp %283 : vector<8x128xf32>
    %cst_48 = arith.constant 1.000000e+00 : f32
    %285 = vector.broadcast %cst_48 : f32 to vector<8x128xf32>
    %286 = arith.addf %285, %284 : vector<8x128xf32>
    %287 = arith.divf %285, %286 : vector<8x128xf32>
    %288 = vector.extract_strided_slice %280 {offsets = [0, 64], sizes = [8, 32], strides = [1, 1]} : vector<8x128xf32> to vector<8x32xf32>
    %289 = math.tanh %288 : vector<8x32xf32>
    %290 = vector.extract_strided_slice %287 {offsets = [0, 32], sizes = [8, 32], strides = [1, 1]} : vector<8x128xf32> to vector<8x32xf32>
    %291 = arith.mulf %290, %256 : vector<8x32xf32>
    %292 = vector.extract_strided_slice %287 {offsets = [0, 0], sizes = [8, 32], strides = [1, 1]} : vector<8x128xf32> to vector<8x32xf32>
    %293 = arith.mulf %292, %289 : vector<8x32xf32>
    %294 = arith.addf %291, %293 : vector<8x32xf32>
    %295 = vector.extract_strided_slice %287 {offsets = [0, 96], sizes = [8, 32], strides = [1, 1]} : vector<8x128xf32> to vector<8x32xf32>
    %296 = math.tanh %294 : vector<8x32xf32>
    %297 = arith.mulf %295, %296 : vector<8x32xf32>
    %298 = arith.negf %282 : vector<8x128xf32>
    %299 = math.exp %298 : vector<8x128xf32>
    %cst_49 = arith.constant 1.000000e+00 : f32
    %300 = vector.broadcast %cst_49 : f32 to vector<8x128xf32>
    %301 = arith.addf %300, %299 : vector<8x128xf32>
    %302 = arith.divf %300, %301 : vector<8x128xf32>
    %303 = vector.extract_strided_slice %282 {offsets = [0, 64], sizes = [8, 32], strides = [1, 1]} : vector<8x128xf32> to vector<8x32xf32>
    %304 = math.tanh %303 : vector<8x32xf32>
    %305 = vector.extract_strided_slice %302 {offsets = [0, 32], sizes = [8, 32], strides = [1, 1]} : vector<8x128xf32> to vector<8x32xf32>
    %306 = arith.mulf %305, %271 : vector<8x32xf32>
    %307 = vector.extract_strided_slice %302 {offsets = [0, 0], sizes = [8, 32], strides = [1, 1]} : vector<8x128xf32> to vector<8x32xf32>
    %308 = arith.mulf %307, %304 : vector<8x32xf32>
    %309 = arith.addf %306, %308 : vector<8x32xf32>
    %310 = vector.extract_strided_slice %302 {offsets = [0, 96], sizes = [8, 32], strides = [1, 1]} : vector<8x128xf32> to vector<8x32xf32>
    %311 = math.tanh %309 : vector<8x32xf32>
    %312 = arith.mulf %310, %311 : vector<8x32xf32>
    %cst_50 = arith.constant dense<0.000000e+00> : vector<8x256xf32>
    %313 = tpu.matmul %312, %66, %cst_50 {dimension_numbers = #tpu.dot_dimension_numbers<[1], [0], [0], [1], [0, 0, 1, 1], [], []>} : vector<8x32xf32>, vector<32x256xf32>, vector<8x256xf32> -> vector<8x256xf32>
    %314 = vector.extract_strided_slice %313 {offsets = [0, 128], sizes = [8, 128], strides = [1, 1]} : vector<8x256xf32> to vector<8x128xf32>
    %cst_51 = arith.constant dense<0.000000e+00> : vector<8x128xf32>
    %315 = tpu.matmul %297, %67, %cst_51 {dimension_numbers = #tpu.dot_dimension_numbers<[1], [0], [0], [1], [0, 0, 1, 1], [], []>} : vector<8x32xf32>, vector<32x128xf32>, vector<8x128xf32> -> vector<8x128xf32>
    %316 = arith.addf %314, %315 : vector<8x128xf32>
    %317 = vector.broadcast %68 : vector<1x128xf32> to vector<8x128xf32>
    %318 = arith.addf %316, %317 : vector<8x128xf32>
    %319 = vector.extract_strided_slice %313 {offsets = [0, 0], sizes = [8, 128], strides = [1, 1]} : vector<8x256xf32> to vector<8x128xf32>
    %320 = arith.addf %65, %319 : vector<8x128xf32>
    %321 = arith.negf %318 : vector<8x128xf32>
    %322 = math.exp %321 : vector<8x128xf32>
    %cst_52 = arith.constant 1.000000e+00 : f32
    %323 = vector.broadcast %cst_52 : f32 to vector<8x128xf32>
    %324 = arith.addf %323, %322 : vector<8x128xf32>
    %325 = arith.divf %323, %324 : vector<8x128xf32>
    %326 = vector.extract_strided_slice %318 {offsets = [0, 64], sizes = [8, 32], strides = [1, 1]} : vector<8x128xf32> to vector<8x32xf32>
    %327 = math.tanh %326 : vector<8x32xf32>
    %328 = vector.extract_strided_slice %325 {offsets = [0, 32], sizes = [8, 32], strides = [1, 1]} : vector<8x128xf32> to vector<8x32xf32>
    %329 = arith.mulf %328, %294 : vector<8x32xf32>
    %330 = vector.extract_strided_slice %325 {offsets = [0, 0], sizes = [8, 32], strides = [1, 1]} : vector<8x128xf32> to vector<8x32xf32>
    %331 = arith.mulf %330, %327 : vector<8x32xf32>
    %332 = arith.addf %329, %331 : vector<8x32xf32>
    %333 = vector.extract_strided_slice %325 {offsets = [0, 96], sizes = [8, 32], strides = [1, 1]} : vector<8x128xf32> to vector<8x32xf32>
    %334 = math.tanh %332 : vector<8x32xf32>
    %335 = arith.mulf %333, %334 : vector<8x32xf32>
    %336 = arith.negf %320 : vector<8x128xf32>
    %337 = math.exp %336 : vector<8x128xf32>
    %cst_53 = arith.constant 1.000000e+00 : f32
    %338 = vector.broadcast %cst_53 : f32 to vector<8x128xf32>
    %339 = arith.addf %338, %337 : vector<8x128xf32>
    %340 = arith.divf %338, %339 : vector<8x128xf32>
    %341 = vector.extract_strided_slice %320 {offsets = [0, 64], sizes = [8, 32], strides = [1, 1]} : vector<8x128xf32> to vector<8x32xf32>
    %342 = math.tanh %341 : vector<8x32xf32>
    %343 = vector.extract_strided_slice %340 {offsets = [0, 32], sizes = [8, 32], strides = [1, 1]} : vector<8x128xf32> to vector<8x32xf32>
    %344 = arith.mulf %343, %309 : vector<8x32xf32>
    %345 = vector.extract_strided_slice %340 {offsets = [0, 0], sizes = [8, 32], strides = [1, 1]} : vector<8x128xf32> to vector<8x32xf32>
    %346 = arith.mulf %345, %342 : vector<8x32xf32>
    %347 = arith.addf %344, %346 : vector<8x32xf32>
    %348 = vector.extract_strided_slice %340 {offsets = [0, 96], sizes = [8, 32], strides = [1, 1]} : vector<8x128xf32> to vector<8x32xf32>
    %349 = math.tanh %347 : vector<8x32xf32>
    %350 = arith.mulf %348, %349 : vector<8x32xf32>
    %351 = vector.extract_strided_slice %66 {offsets = [0, 128], sizes = [32, 128], strides = [1, 1]} : vector<32x256xf32> to vector<32x128xf32>
    %cst_54 = arith.constant dense<0.000000e+00> : vector<8x128xf32>
    %352 = tpu.matmul %350, %351, %cst_54 {dimension_numbers = #tpu.dot_dimension_numbers<[1], [0], [0], [1], [0, 0, 1, 1], [], []>} : vector<8x32xf32>, vector<32x128xf32>, vector<8x128xf32> -> vector<8x128xf32>
    %cst_55 = arith.constant dense<0.000000e+00> : vector<8x128xf32>
    %353 = tpu.matmul %335, %67, %cst_55 {dimension_numbers = #tpu.dot_dimension_numbers<[1], [0], [0], [1], [0, 0, 1, 1], [], []>} : vector<8x32xf32>, vector<32x128xf32>, vector<8x128xf32> -> vector<8x128xf32>
    %354 = arith.addf %352, %353 : vector<8x128xf32>
    %355 = vector.broadcast %68 : vector<1x128xf32> to vector<8x128xf32>
    %356 = arith.addf %354, %355 : vector<8x128xf32>
    %357 = arith.negf %356 : vector<8x128xf32>
    %358 = math.exp %357 : vector<8x128xf32>
    %cst_56 = arith.constant 1.000000e+00 : f32
    %359 = vector.broadcast %cst_56 : f32 to vector<8x128xf32>
    %360 = arith.addf %359, %358 : vector<8x128xf32>
    %361 = arith.divf %359, %360 : vector<8x128xf32>
    %362 = vector.extract_strided_slice %356 {offsets = [0, 64], sizes = [8, 32], strides = [1, 1]} : vector<8x128xf32> to vector<8x32xf32>
    %363 = math.tanh %362 : vector<8x32xf32>
    %364 = vector.extract_strided_slice %361 {offsets = [0, 32], sizes = [8, 32], strides = [1, 1]} : vector<8x128xf32> to vector<8x32xf32>
    %365 = arith.mulf %364, %332 : vector<8x32xf32>
    %366 = vector.extract_strided_slice %361 {offsets = [0, 0], sizes = [8, 32], strides = [1, 1]} : vector<8x128xf32> to vector<8x32xf32>
    %367 = arith.mulf %366, %363 : vector<8x32xf32>
    %368 = arith.addf %365, %367 : vector<8x32xf32>
    %369 = vector.extract_strided_slice %361 {offsets = [0, 96], sizes = [8, 32], strides = [1, 1]} : vector<8x128xf32> to vector<8x32xf32>
    %370 = math.tanh %368 : vector<8x32xf32>
    %371 = arith.mulf %369, %370 : vector<8x32xf32>
    %c0_57 = arith.constant 0 : index
    %c0_58 = arith.constant 0 : index
    %372 = vector.load %arg10[%c0_57, %c0_58] : memref<32x32xf32, #tpu.memory_space<vmem>>, vector<32x32xf32>
    %cst_59 = arith.constant dense<0.000000e+00> : vector<8x32xf32>
    %373 = tpu.matmul %371, %372, %cst_59 {dimension_numbers = #tpu.dot_dimension_numbers<[1], [0], [0], [1], [0, 0, 1, 1], [], []>} : vector<8x32xf32>, vector<32x32xf32>, vector<8x32xf32> -> vector<8x32xf32>
    %374 = arith.addf %373, %10 : vector<8x32xf32>
    %cst_60 = arith.constant 0.000000e+00 : f32
    %375 = vector.broadcast %cst_60 : f32 to vector<8x32xf32>
    %376 = arith.maximumf %374, %375 : vector<8x32xf32>
    %c0_61 = arith.constant 0 : index
    %c0_62 = arith.constant 0 : index
    %377 = vector.load %arg13[%c0_61, %c0_62] : memref<32x1xf32, #tpu.memory_space<vmem>>, vector<32x1xf32>
    %cst_63 = arith.constant dense<0.000000e+00> : vector<8x1xf32>
    %378 = tpu.matmul %376, %377, %cst_63 {dimension_numbers = #tpu.dot_dimension_numbers<[1], [0], [0], [1], [0, 0, 1, 1], [], []>} : vector<8x32xf32>, vector<32x1xf32>, vector<8x1xf32> -> vector<8x1xf32>
    %c0_64 = arith.constant 0 : index
    %c0_65 = arith.constant 0 : index
    %379 = vector.load %arg14[%c0_64, %c0_65] : memref<1x1xf32, #tpu.memory_space<vmem>>, vector<1x1xf32>
    %380 = vector.broadcast %379 : vector<1x1xf32> to vector<8x1xf32>
    %381 = arith.addf %378, %380 : vector<8x1xf32>
    %cst_66 = arith.constant 1.000000e+00 : f32
    %382 = vector.broadcast %cst_66 : f32 to vector<8x1xf32>
    %383 = arith.mulf %381, %382 : vector<8x1xf32>
    %cst_67 = arith.constant 0.000000e+00 : f32
    %384 = vector.broadcast %cst_67 : f32 to vector<8x1xf32>
    %385 = arith.addf %383, %384 : vector<8x1xf32>
    %c0_68 = arith.constant 0 : index
    %c0_69 = arith.constant 0 : index
    %386 = vector.load %arg15[%c0_68, %c0_69] : memref<8x1xf32, #tpu.memory_space<vmem>>, vector<8x1xf32>
    tpu.vector_store %arg15[%c0_68, %c0_69], %385 {strides = array<i32>} : memref<8x1xf32, #tpu.memory_space<vmem>>, vector<8x1xf32>,
    return
  }
  func.func @transform_0(%arg0: i32) -> (i32, i32) {
    %c0_i32 = arith.constant 0 : i32
    %c0_i32_0 = arith.constant 0 : i32
    return %arg0, %c0_i32 : i32, i32
  }
  func.func @transform_1(%arg0: i32) -> (i32, i32) {
    %c0_i32 = arith.constant 0 : i32
    %c0_i32_0 = arith.constant 0 : i32
    return %arg0, %c0_i32 : i32, i32
  }
  func.func @transform_2(%arg0: i32) -> (i32, i32) {
    %c0_i32 = arith.constant 0 : i32
    %c0_i32_0 = arith.constant 0 : i32
    %c0_i32_1 = arith.constant 0 : i32
    return %c0_i32, %c0_i32_0 : i32, i32
  }
  func.func @transform_3(%arg0: i32) -> (i32, i32) {
    %c0_i32 = arith.constant 0 : i32
    %c0_i32_0 = arith.constant 0 : i32
    %c0_i32_1 = arith.constant 0 : i32
    return %c0_i32, %c0_i32_0 : i32, i32
  }
  func.func @transform_4(%arg0: i32) -> (i32, i32) {
    %c0_i32 = arith.constant 0 : i32
    %c0_i32_0 = arith.constant 0 : i32
    %c0_i32_1 = arith.constant 0 : i32
    return %c0_i32, %c0_i32_0 : i32, i32
  }
  func.func @transform_5(%arg0: i32) -> (i32, i32) {
    %c0_i32 = arith.constant 0 : i32
    %c0_i32_0 = arith.constant 0 : i32
    %c0_i32_1 = arith.constant 0 : i32
    return %c0_i32, %c0_i32_0 : i32, i32
  }
  func.func @transform_6(%arg0: i32) -> (i32, i32) {
    %c0_i32 = arith.constant 0 : i32
    %c0_i32_0 = arith.constant 0 : i32
    %c0_i32_1 = arith.constant 0 : i32
    return %c0_i32, %c0_i32_0 : i32, i32
  }
  func.func @transform_7(%arg0: i32) -> (i32, i32) {
    %c0_i32 = arith.constant 0 : i32
    %c0_i32_0 = arith.constant 0 : i32
    %c0_i32_1 = arith.constant 0 : i32
    return %c0_i32, %c0_i32_0 : i32, i32
  }
  func.func @transform_8(%arg0: i32) -> (i32, i32) {
    %c0_i32 = arith.constant 0 : i32
    %c0_i32_0 = arith.constant 0 : i32
    %c0_i32_1 = arith.constant 0 : i32
    return %c0_i32, %c0_i32_0 : i32, i32
  }
  func.func @transform_9(%arg0: i32) -> (i32, i32) {
    %c0_i32 = arith.constant 0 : i32
    %c0_i32_0 = arith.constant 0 : i32
    %c0_i32_1 = arith.constant 0 : i32
    return %c0_i32, %c0_i32_0 : i32, i32
  }
  func.func @transform_10(%arg0: i32) -> (i32, i32) {
    %c0_i32 = arith.constant 0 : i32
    %c0_i32_0 = arith.constant 0 : i32
    %c0_i32_1 = arith.constant 0 : i32
    return %c0_i32, %c0_i32_0 : i32, i32
  }
  func.func @transform_11(%arg0: i32) -> (i32, i32) {
    %c0_i32 = arith.constant 0 : i32
    %c0_i32_0 = arith.constant 0 : i32
    %c0_i32_1 = arith.constant 0 : i32
    return %c0_i32, %c0_i32_0 : i32, i32
  }
  func.func @transform_12(%arg0: i32) -> (i32, i32) {
    %c0_i32 = arith.constant 0 : i32
    %c0_i32_0 = arith.constant 0 : i32
    %c0_i32_1 = arith.constant 0 : i32
    return %c0_i32, %c0_i32_0 : i32, i32
  }
  func.func @transform_13(%arg0: i32) -> (i32, i32) {
    %c0_i32 = arith.constant 0 : i32
    %c0_i32_0 = arith.constant 0 : i32
    %c0_i32_1 = arith.constant 0 : i32
    return %c0_i32, %c0_i32_0 : i32, i32
  }
  func.func @transform_14(%arg0: i32) -> (i32, i32) {
    %c0_i32 = arith.constant 0 : i32
    %c0_i32_0 = arith.constant 0 : i32
    return %arg0, %c0_i32 : i32, i32
  }
}

</mosaic_0001>

<bundles_post_ra>
// kernel: decoder_forward.1
= control target key start
LH: loop header
LB: loop body
LE: loop exit
PB: predicated region body
PF: predicated region fallthrough
CT: control target
= control target key end

     0   :  { %s3410_s0 = inlined_call_operand.hbm [shape: f32[8,8], index: 0, kind: input, shape index: {}]   ;;  %s3411_s1 = inlined_call_operand.hbm [shape: f32[8,16], index: 1, kind: input, shape index: {}]   ;;  %s3412_s2 = inlined_call_operand.vmem [shape: f32[1,128], index: 2, kind: input, shape index: {}]   ;;  %s3413_s3 = inlined_call_operand.vmem [shape: f32[1,128], index: 3, kind: input, shape index: {}]   ;;  %s3414_s4 = inlined_call_operand.hbm [shape: f32[32,256], index: 4, kind: input, shape index: {}]   ;;  %s3415_s5 = inlined_call_operand.vmem [shape: f32[32,128], index: 5, kind: input, shape index: {}]   ;;  %s3416_s6 = inlined_call_operand.hbm [shape: f32[1,128], index: 6, kind: input, shape index: {}]   ;;  %s3417_s7 = inlined_call_operand.vmem [shape: f32[16,32], index: 7, kind: input, shape index: {}]   ;;  %s3418_s8 = inlined_call_operand.hbm [shape: f32[1,32], index: 8, kind: input, shape index: {}]   ;;  %s3419_s9 = inlined_call_operand.hbm [shape: f32[32,32], index: 9, kind: input, shape index: {}]   ;;  %s3420_s10 = inlined_call_operand.vmem [shape: f32[32,32], index: 10, kind: input, shape index: {}]   ;;  %s3421_s11 = inlined_call_operand.hbm [shape: f32[1,32], index: 11, kind: input, shape index: {}]   ;;  %s3422_s12 = inlined_call_operand.vmem [shape: f32[32,1], index: 12, kind: input, shape index: {}]   ;;  %s3423_s13 = inlined_call_operand.<no memory space> [shape: f32[1,1], index: 13, kind: input, shape index: {}]   ;;  %s3424_s14 = inlined_call_operand.vmem [shape: f32[8,1], index: 14, kind: output, shape index: {}]  }
   0x1   :  { %v19_v0 = vstv %s3423_s13 }
   0x2   :  { %20 = vst [vmem:[#allocation2] sm:$0x1] %v19_v0 }
   0x3   :  { %21 = vsyncpa [#allocation4], 0 }
   0x4   :  { %22 = vsyncpa [#allocation6], 0 }
   0x5   :  { %23 = vsyncpa [#allocation9], 0 }
   0x6   :  { %24 = vsyncpa [#allocation12], 0  ;;  %s2873_s15 = smov [#allocation5]   ;;  %s2874_s17 = smov [#allocation8]  }
   0x7   :  { %s41_s16 = sshll.u32 %s2873_s15, 4  ;;  %s69_s18 = sshll.u32 %s2874_s17, 4  ;;  %s42_s16 = int_to_ptr.vmem [resolvable:$true] %s41_s16  ;;  %s70_s18 = int_to_ptr.vmem [resolvable:$true] %s69_s18 }
   0x8   :  { %s2711_s21 = scalar_lea.hbm %s3411_s1, 128 }
   0x9   :  { %p2712_p0 = scmp.ne.s32.totalorder %s3411_s1, %s2711_s21  ;;  %p2715_p1 = scmp.lt.u32.totalorder %s2711_s21, %s3411_s1 }
   0xb   :  { %p2717_p2 = pnand %p2715_p1, %p2712_p0 }
   0xd   :  { %2720 = shalt.err (!%p2717_p2)
}
   0xe   :  { %s2721_s25 = scalar_lea.vmem %s42_s16, 128  ;;  %p2726_p4 = scmp.lt.s32.totalorder %s42_s16, %s42_s16 }
   0xf   :  { %p2722_p3 = scmp.ne.s32.totalorder %s42_s16, %s2721_s25  ;;  %p2727_p5 = scmp.lt.s32.totalorder %s2721_s25, %s2721_s25 }
  0x11   :  { %p2728_p6 = por %p2727_p5, %p2726_p4 }
  0x13   :  { %p2729_p7 = pnand %p2728_p6, %p2722_p3 }
  0x15   :  { %2732 = shalt.err (!%p2729_p7)
}
  0x16   :  { %44 = dma.hbm_to_vmem [thread:$0]  %s3411_s1, 128, %s42_s16, [#allocation6]  }
  0x17   :  { %s2733_s30 = scalar_lea.hbm %s3416_s6, 16 }
  0x18   :  { %p2734_p8 = scmp.ne.s32.totalorder %s3416_s6, %s2733_s30  ;;  %p2737_p9 = scmp.lt.u32.totalorder %s2733_s30, %s3416_s6 }
  0x1a   :  { %p2739_p10 = pnand %p2737_p9, %p2734_p8 }
  0x1c   :  { %2742 = shalt.err (!%p2739_p10)
}
  0x1d   :  { %s2743_s21 = scalar_lea.vmem %s70_s18, 16  ;;  %s2747_s22 = scalar_lea.vmem %s70_s18, 32 }
  0x1e   :  { %p2744_p11 = scmp.ne.s32.totalorder %s70_s18, %s2743_s21  ;;  %p2748_p12 = scmp.lt.s32.totalorder %s70_s18, %s70_s18 }
  0x1f   :  { %p2749_p13 = scmp.lt.s32.totalorder %s2747_s22, %s2743_s21 }
  0x21   :  { %p2750_p0 = por %p2749_p13, %p2748_p12 }
  0x23   :  { %p2751_p1 = pnand %p2750_p0, %p2744_p11 }
  0x25   :  { %2754 = shalt.err (!%p2751_p1)
}
  0x26   :  { %72 = dma.hbm_to_vmem [thread:$0]  %s3416_s6, 16, %s70_s18, [#allocation9]  }
  0x27   :  { %s2875_s23 = smov [#allocation11]   ;;  %s2755_s26 = scalar_lea.hbm %s3419_s9, 512 }
  0x28   :  { %s90_s13 = sshll.u32 %s2875_s23, 4  ;;  %p2756_p2 = scmp.ne.s32.totalorder %s3419_s9, %s2755_s26  ;;  %s91_s13 = int_to_ptr.vmem [resolvable:$true] %s90_s13 }
  0x29   :  { %p2759_p3 = scmp.lt.u32.totalorder %s2755_s26, %s3419_s9 }
  0x2b   :  { %p2761_p4 = pnand %p2759_p3, %p2756_p2 }
  0x2d   :  { %2764 = shalt.err (!%p2761_p4)
}
  0x2e   :  { %s2765_s15 = scalar_lea.vmem %s91_s13, 512  ;;  %p2770_p6 = scmp.lt.s32.totalorder %s91_s13, %s91_s13 }
  0x2f   :  { %p2766_p5 = scmp.ne.s32.totalorder %s91_s13, %s2765_s15  ;;  %p2771_p7 = scmp.lt.s32.totalorder %s2765_s15, %s2765_s15 }
  0x31   :  { %p2772_p8 = por %p2771_p7, %p2770_p6 }
  0x33   :  { %p2773_p9 = pnand %p2772_p8, %p2766_p5 }
  0x35   :  { %2776 = shalt.err (!%p2773_p9)
}
  0x36   :  { %s2876_s6 = smov 128   ;;  %s2877_s18 = smov 8  }
  0x37   :  { %96 = dma.hbm_to_vmem [thread:$0]  %s3419_s9, 512, %s91_s13, [#allocation12], %s2876_s6, %s2876_s6, %s2877_s18  }
  0x38   :  { %s2878_s20 = smov [#allocation3]   ;;  %s2879_s22 = smov [#allocation7]  }
  0x39   :  { %s31_s21 = sshll.u32 %s2878_s20, 4  ;;  %s54_s1 = sshll.u32 %s2879_s22, 4  ;;  %s32_s21 = int_to_ptr.vmem [resolvable:$true] %s31_s21  ;;  %s55_s1 = int_to_ptr.vmem [resolvable:$true] %s54_s1 }
  0x3a   :  { %s2777_s24 = scalar_lea.hbm %s3410_s0, 128 }
  0x3b   :  { %p2778_p10 = scmp.ne.s32.totalorder %s3410_s0, %s2777_s24  ;;  %p2781_p11 = scmp.lt.u32.totalorder %s2777_s24, %s3410_s0 }
  0x3d   :  { %p2783_p12 = pnand %p2781_p11, %p2778_p10 }
  0x3f   :  { %2786 = shalt.err (!%p2783_p12)
}
  0x40   :  { %s2787_s9 = scalar_lea.vmem %s32_s21, 128  ;;  %p2792_p0 = scmp.lt.s32.totalorder %s32_s21, %s32_s21 }
  0x41   :  { %p2788_p13 = scmp.ne.s32.totalorder %s32_s21, %s2787_s9  ;;  %p2793_p1 = scmp.lt.s32.totalorder %s2787_s9, %s2787_s9 }
  0x43   :  { %p2794_p2 = por %p2793_p1, %p2792_p0 }
  0x45   :  { %p2795_p3 = pnand %p2794_p2, %p2788_p13 }
  0x47   :  { %2798 = shalt.err (!%p2795_p3)
}
  0x48   :  { %34 = dma.hbm_to_vmem [thread:$0]  %s3410_s0, 128, %s32_s21, [#allocation4]  }
  0x49   :  { %s2799_s6 = scalar_lea.hbm %s3414_s4, 1024 }
  0x4a   :  { %p2800_p4 = scmp.ne.s32.totalorder %s3414_s4, %s2799_s6  ;;  %p2803_p5 = scmp.lt.u32.totalorder %s2799_s6, %s3414_s4 }
  0x4c   :  { %p2805_p6 = pnand %p2803_p5, %p2800_p4 }
  0x4e   :  { %2808 = shalt.err (!%p2805_p6)
}
  0x4f   :  { %s2809_s22 = scalar_lea.vmem %s55_s1, 1024  ;;  %p2814_p8 = scmp.lt.s32.totalorder %s55_s1, %s55_s1 }
  0x50   :  { %p2810_p7 = scmp.ne.s32.totalorder %s55_s1, %s2809_s22  ;;  %p2815_p9 = scmp.lt.s32.totalorder %s2809_s22, %s2809_s22 }
  0x52   :  { %p2816_p10 = por %p2815_p9, %p2814_p8 }
  0x54   :  { %p2817_p11 = pnand %p2816_p10, %p2810_p7 }
  0x56   :  { %2820 = shalt.err (!%p2817_p11)
}
  0x57   :  { %s2880_s0 = smov 256   ;;  %s2881_s21 = smov 16  }
  0x58   :  { %60 = dma.hbm_to_vmem [thread:$0]  %s3414_s4, 1024, %s55_s1, [#allocation6], %s2880_s0, %s2880_s0, %s2881_s21  }
  0x59   :  { %s2882_s24 = smov [#allocation10]   ;;  %s2883_s26 = smov [#allocation13]  }
  0x5a   :  { %s81_s25 = sshll.u32 %s2882_s24, 4  ;;  %s105_s27 = sshll.u32 %s2883_s26, 4  ;;  %s82_s25 = int_to_ptr.vmem [resolvable:$true] %s81_s25  ;;  %s106_s27 = int_to_ptr.vmem [resolvable:$true] %s105_s27 }
  0x5b   :  { %s2821_s13 = scalar_lea.hbm %s3418_s8, 16 }
  0x5c   :  { %p2822_p12 = scmp.ne.s32.totalorder %s3418_s8, %s2821_s13  ;;  %p2825_p13 = scmp.lt.u32.totalorder %s2821_s13, %s3418_s8 }
  0x5e   :  { %p2827_p0 = pnand %p2825_p13, %p2822_p12 }
  0x60   :  { %2830 = shalt.err (!%p2827_p0)
}
  0x61   :  { %s2831_s4 = scalar_lea.vmem %s82_s25, 16  ;;  %s2835_s1 = scalar_lea.vmem %s82_s25, 32 }
  0x62   :  { %p2832_p1 = scmp.ne.s32.totalorder %s82_s25, %s2831_s4  ;;  %p2836_p2 = scmp.lt.s32.totalorder %s82_s25, %s82_s25 }
  0x63   :  { %p2837_p3 = scmp.lt.s32.totalorder %s2835_s1, %s2831_s4 }
  0x65   :  { %p2838_p4 = por %p2837_p3, %p2836_p2 }
  0x67   :  { %p2839_p5 = pnand %p2838_p4, %p2832_p1 }
  0x69   :  { %2842 = shalt.err (!%p2839_p5)
}
  0x6a   :  { %84 = dma.hbm_to_vmem [thread:$0]  %s3418_s8, 16, %s82_s25, [#allocation9]  }
  0x6b   :  { %s2843_s22 = scalar_lea.hbm %s3421_s11, 16 }
  0x6c   :  { %p2844_p6 = scmp.ne.s32.totalorder %s3421_s11, %s2843_s22  ;;  %p2847_p7 = scmp.lt.u32.totalorder %s2843_s22, %s3421_s11 }
  0x6e   :  { %p2849_p8 = pnand %p2847_p7, %p2844_p6 }
  0x70   :  { %2852 = shalt.err (!%p2849_p8)
}
  0x71   :  { %s2853_s24 = scalar_lea.vmem %s106_s27, 16  ;;  %s2857_s26 = scalar_lea.vmem %s106_s27, 32 }
  0x72   :  { %p2854_p9 = scmp.ne.s32.totalorder %s106_s27, %s2853_s24  ;;  %p2858_p10 = scmp.lt.s32.totalorder %s106_s27, %s106_s27 }
  0x73   :  { %p2859_p11 = scmp.lt.s32.totalorder %s2857_s26, %s2853_s24 }
  0x75   :  { %p2860_p12 = por %p2859_p11, %p2858_p10 }
  0x77   :  { %p2861_p13 = pnand %p2860_p12, %p2854_p9 }
  0x79   :  { %2864 = shalt.err (!%p2861_p13)
}
  0x7a   :  { %108 = dma.hbm_to_vmem [thread:$0]  %s3421_s11, 16, %s106_s27, [#allocation12]  }
  0x7b   :  { %2865 = dma.done.wait [#allocation4], 128  }
  0x7c   :  { %2866 = vsyncadd [#allocation4], 4294967168 }
  0x7d   :  { %2867 = dma.done.wait [#allocation6], 1152  }
  0x7e   :  { %2868 = vsyncadd [#allocation6], 4294966144 }
  0x7f   :  { %2869 = dma.done.wait [#allocation9], 32  }
  0x80   :  { %2870 = vsyncadd [#allocation9], 4294967264 }
  0x81   :  { %2871 = dma.done.wait [#allocation12], 528  }
  0x82   :  { %2872 = vsyncadd [#allocation12], 4294966768  ;;  %v2884_v1 = vmov 0   ;;  %v3059_v2 = vld [vmem:[#allocation3] sm:$0xff]  ;;  %v3065_v3 = vld [vmem:[%s3412_s2] ss:$0 sm:$0xff] }
  0x83   :  { %2573 = vset.pattern.permute.xlu0 %v2884_v1  ;;  %v3070_v4 = vld [vmem:[%s3413_s3] ss:$0 sm:$0xff]  ;;  %s2885_s13 = smov 64   ;;  %s2886_s29 = smov 32   ;;  %v136_v16 = vld [vmem:[%s3417_s7 + $0x8] sm:$0xff]  ;;  %v2887_v17 = vmov 0.0|0.0  }
  0x84   :  { %308 = vperm.xlu0 %2573, %v3059_v2   ;;  %v135_v15 = vld [vmem:[%s3417_s7] sm:$0xff]  ;;  %2415 = vmatprep.subr.bf16.mxu0 %v2887_v17  ;;  %vm2888_vm0 = vmmov 0   ;;  %v2889_v19 = vmov 0.0   ;;  %v134_v20 = vld [vmem:[#allocation5] sm:$0xff]  ;;  %vm144_vm1 = vcmask 130048   ;;  %v221_v28 = vld [vmem:[%s3420_s10 + $0x18] sm:$0xff] }
  0x85   :  { %v2416_v18 = vpack.c.bf16 %v136_v16, %v135_v15  ;;  %2280 = vmatprep.mubr.msk.f32.mxu0 %vm2888_vm0, %v2889_v19  ;;  %2418 = vmatprep.subr.bf16.mxu1 %v2887_v17  ;;  %v218_v24 = vld [vmem:[%s3420_s10] sm:$0xff]  ;;  %v219_v25 = vld [vmem:[%s3420_s10 + $0x8] sm:$0xff]  ;;  %v220_v26 = vld [vmem:[%s3420_s10 + $0x10] sm:$0xff]  ;;  %vm229_vm2 = vcmask 261120   ;;  %v2890_v53 = vmov 1   ;;  %vm2162_vm3 = vcmask 7168  }
  0x86   :  { %2291 = vmatprep.mubr.msk.f32.mxu1 %vm2888_vm0, %v2889_v19  ;;  %v2419_v27 = vpack.c.bf16 %v219_v25, %v218_v24  ;;  %v368_v29 = vld [vmem:[#allocation7 + $0x8] sm:$0xff]  ;;  %v370_v30 = vld [vmem:[#allocation7 + $0x18] sm:$0xff]  ;;  %v367_v31 = vld [vmem:[#allocation7] sm:$0xff]  ;;  %v2422_v33 = vpack.c.bf16 %v221_v28, %v220_v26  ;;  %2574 = vset.pattern.permute.xlu1 %v2890_v53 }
  0x87   :  { %2417 = vmatpush3.bf16.msra.mxu0 %v2416_v18  ;;  %v369_v32 = vld [vmem:[#allocation7 + $0x10] sm:$0xff]  ;;  %v3108_v34 = vpack.c.bf16 %v370_v30, %v368_v29  ;;  %v372_v36 = vld [vmem:[#allocation7 + $0x28] sm:$0xff]  ;;  %v374_v37 = vld [vmem:[#allocation7 + $0x38] sm:$0xff] }
  0x88   :  { %2420 = vmatpush3.bf16.msra.mxu1 %v2419_v27  ;;  %v3110_v35 = vpack.c.bf16 %v369_v32, %v367_v31  ;;  %v371_v38 = vld [vmem:[#allocation7 + $0x20] sm:$0xff]  ;;  %v373_v39 = vld [vmem:[#allocation7 + $0x30] sm:$0xff]  ;;  %v3114_v40 = vpack.c.bf16 %v374_v37, %v372_v36  ;;  %v2891_v32 = vmov 2  }
  0x89   :  { %2421 = vmatprep.subr.bf16.mxu1 %v2887_v17  ;;  %2425 = vmatprep.subr.bf16.mxu0 %v3108_v34  ;;  %v3117_v41 = vpack.c.bf16 %v373_v39, %v371_v38  ;;  %v375_v43 = vld [vmem:[%s3415_s5] sm:$0xff]  ;;  %v376_v44 = vld [vmem:[%s3415_s5 + $0x8] sm:$0xff]  ;;  %v2172_v45 = vld [vmem:[#allocation10] ss:$0 sm:$0xff] }
  0x8a   :  { %2281 = vmatmul.mubr.msk.f32.vlgmr.msra.gmra.mrb[0].mxu0 %vm144_vm1, %v134_v20  ;;  %v3130_v47 = vpack.c.bf16 %v376_v44, %v375_v43  ;;  %v377_v50 = vld [vmem:[%s3415_s5 + $0x10] sm:$0xff]  ;;  %v378_v51 = vld [vmem:[%s3415_s5 + $0x18] sm:$0xff]  ;;  %2575 = vset.pattern.permute.xlu0 %v2891_v32 }
  0x8b   :  { %473 = vmatprep.mubr.f32.mxu0 %v2889_v19  ;;  %2427 = vmatpush1.bf16.msra.mxu0 %v3110_v35  ;;  %v3140_v52 = vpack.c.bf16 %v378_v51, %v377_v50  ;;  %v3165_v0 = vld [vmem:[#allocation8] ss:$0 sm:$0xff] }
  0x8c   :  { %2423 = vmatpush3.bf16.msra.mxu1 %v2422_v33  ;;  %2429 = vmatprep.subr.bf16.mxu0 %v3114_v40 }
  0x8d   :  { %2432 = vmatprep.subr.bf16.mxu1 %v2887_v17 }
  0x8f   :  { %2431 = vmatpush1.bf16.msra.mxu0 %v3117_v41 }
  0x90   :  { %2439 = vmatprep.subr.bf16.mxu0 %v3108_v34 }
 0x103   :  { %v309_v5 = vpop.permute.xlu0 %308 }
 0x104   :  { %v317_v6 = vmul.f32 %v3065_v3, %v309_v5 }
 0x106   :  { %v324_v7 = vadd.f32 %v3070_v4, %v317_v6 }
 0x108   :  { %2581 = vtanh.f32 %v324_v7  ;;  %v2178_v9 = vmul.f32 -1.442695, %v324_v7 }
 0x10a   :  { %2583 = vpow2.f32 %v2178_v9 }
 0x112   :  { %v2582_v8 = vpop.eup %2581 }
 0x113   :  { %389 = vrot.lane.b32.xlu0 %v2582_v8, %s2885_s13 }
 0x114   :  { %v2584_v10 = vpop.eup %2583 }
 0x115   :  { %v383_v11 = vadd.f32 1.0, %v2584_v10 }
 0x117   :  { %2585 = vrcp.f32 %v383_v11 }
 0x121   :  { %v3075_v12 = vpop.eup %2585 }
 0x122   :  { %v387_v21 = vmul.f32 0.0, %v3075_v12 }
 0x15d   :  { %v214_v46 = vpop.f32.mrb[0].mxu0 }
 0x15e   :  { %v215_v48 = vadd.f32 %v2172_v45, %v214_v46  ;;  %v2282_v49 = vpop.f32.mrb[1].mxu0 }
 0x160   :  { %2292 = vmatmul.mubr.msk.f32.vlgmr.msra.gmra.mrb[0].mxu1 %vm229_vm2, %v215_v48 }
 0x161   :  { %2434 = vmatpush3.bf16.msra.mxu1 %v3130_v47  ;;  %2302 = vmatprep.mubr.msk.f32.mxu1 %vm2888_vm0, %v2889_v19 }
 0x162   :  { %2435 = vmatprep.subr.bf16.mxu1 %v2887_v17 }
 0x165   :  { %2437 = vmatpush3.bf16.msra.mxu1 %v3140_v52 }
 0x166   :  { %2446 = vmatprep.subr.bf16.mxu1 %v2887_v17 }
 0x168   :  { %2303 = vmatmul.mubr.f32.vlgmr.msra.gmra.mrb[2].mxu1 %v2889_v19 }
 0x169   :  { %2448 = vmatpush3.bf16.msra.mxu1 %v3130_v47  ;;  %2313 = vmatprep.mubr.msk.f32.mxu1 %vm2888_vm0, %v2889_v19 }
 0x16a   :  { %2449 = vmatprep.subr.bf16.mxu1 %v2887_v17 }
 0x16d   :  { %2451 = vmatpush3.bf16.msra.mxu1 %v3140_v52 }
 0x16e   :  { %2460 = vmatprep.subr.bf16.mxu1 %v2887_v17 }
 0x185   :  { %v390_v13 = vpop.permute.xlu0 %389 }
 0x186   :  { %v392_v14 = vmul.f32 %v3075_v12, %v390_v13 }
 0x188   :  { %394 = vrot.lane.b32.xlu1 %v392_v14, %s2886_s29 }
 0x1fa   :  { %v395_v22 = vpop.permute.xlu1 %394 }
 0x1fb   :  { %v3093_v23 = vadd.f32 %v395_v22, %v387_v21 }
 0x1fd   :  { %2587 = vtanh.f32 %v3093_v23 }
 0x207   :  { %v2588_v42 = vpop.eup %2587 }
 0x208   :  { %400 = vrot.lane.b32.xlu1 %v2588_v42, %s2885_s13 }
 0x20c   :  { %326 = vperm.xlu1 %2574, %v3059_v2  }
 0x23b   :  { %v549_v57 = vpop.f32.mrb[2].mxu1 }
 0x23c   :  { %v2304_v58 = vpop.f32.mrb[3].mxu1 }
 0x27a   :  { %v401_v54 = vpop.permute.xlu1 %400 }
 0x27b   :  { %v403_v55 = vmul.f32 %v3075_v12, %v401_v54 }
 0x27d   :  { %405 = vrot.lane.b32.xlu0 %v403_v55, %s2886_s29 }
 0x28b   :  { %v327_v59 = vpop.permute.xlu1 %326 }
 0x28c   :  { %v329_v60 = vmul.f32 %v3065_v3, %v327_v59 }
 0x28e   :  { %v330_v61 = vadd.f32 %v3070_v4, %v329_v60 }
 0x2ef   :  { %v406_v56 = vpop.permute.xlu0 %405 }
 0x2f0   :  { %2179 = vmatmul.mubr.msk.f32.vlgmr.msra.gmra.mrb[2].mxu0 %vm229_vm2, %v406_v56 }
 0x2f1   :  { %2441 = vmatpush1.bf16.msra.mxu0 %v3110_v35  ;;  %679 = vmatprep.mubr.f32.mxu0 %v2889_v19 }
 0x2f2   :  { %2443 = vmatprep.subr.bf16.mxu0 %v3114_v40 }
 0x2f5   :  { %2445 = vmatpush1.bf16.msra.mxu0 %v3117_v41 }
 0x2f6   :  { %2453 = vmatprep.subr.bf16.mxu0 %v3108_v34 }
 0x3c3   :  { %v475_v62 = vpop.f32.mrb[2].mxu0 }
 0x3c4   :  { %v561_v63 = vadd.f32 %v475_v62, %v330_v61  ;;  %v477_v1 = vpop.f32.mrb[3].mxu0 }
 0x3c5   :  { %v553_v5 = vadd.f32 %v549_v57, %v477_v1 }
 0x3c6   :  { %2589 = vtanh.f32 %v561_v63  ;;  %v2182_v9 = vmul.f32 -1.442695, %v561_v63 }
 0x3c7   :  { %v560_v6 = vadd.f32 %v3165_v0, %v553_v5 }
 0x3c9   :  { %2591 = vtanh.f32 %v560_v6  ;;  %v2181_v10 = vmul.f32 -1.442695, %v560_v6 }
 0x3ca   :  { %2593 = vpow2.f32 %v2182_v9 }
 0x3cb   :  { %2595 = vpow2.f32 %v2181_v10 }
 0x3d0   :  { %v2590_v7 = vpop.eup %2589 }
 0x3d1   :  { %595 = vrot.lane.b32.xlu0 %v2590_v7, %s2885_s13 }
 0x3d3   :  { %v2592_v8 = vpop.eup %2591 }
 0x3d4   :  { %571 = vrot.lane.b32.xlu1 %v2592_v8, %s2885_s13  ;;  %v2594_v11 = vpop.eup %2593 }
 0x3d5   :  { %v2596_v12 = vpop.eup %2595  ;;  %v589_v13 = vadd.f32 1.0, %v2594_v11 }
 0x3d6   :  { %v565_v14 = vadd.f32 1.0, %v2596_v12 }
 0x3d7   :  { %2597 = vrcp.f32 %v589_v13 }
 0x3d8   :  { %2599 = vrcp.f32 %v565_v14 }
 0x3e1   :  { %v2598_v15 = vpop.eup %2597 }
 0x3e2   :  { %v2600_v20 = vpop.eup %2599  ;;  %v593_v24 = vmul.f32 %v2598_v15, %v3093_v23 }
 0x3e3   :  { %v569_v27 = vmul.f32 0.0, %v2600_v20 }
 0x443   :  { %v596_v16 = vpop.permute.xlu0 %595 }
 0x444   :  { %v598_v18 = vmul.f32 %v2598_v15, %v596_v16  ;;  %v2892_v16 = vmov 3  }
 0x446   :  { %600 = vrot.lane.b32.xlu0 %v598_v18, %s2886_s29  ;;  %v572_v21 = vpop.permute.xlu1 %571 }
 0x447   :  { %v574_v22 = vmul.f32 %v2600_v20, %v572_v21 }
 0x449   :  { %576 = vrot.lane.b32.xlu1 %v574_v22, %s2886_s29 }
 0x4b8   :  { %v601_v25 = vpop.permute.xlu0 %600 }
 0x4b9   :  { %v3173_v26 = vadd.f32 %v601_v25, %v593_v24 }
 0x4bb   :  { %2601 = vtanh.f32 %v3173_v26  ;;  %v577_v28 = vpop.permute.xlu1 %576 }
 0x4bc   :  { %v3176_v29 = vadd.f32 %v577_v28, %v569_v27 }
 0x4be   :  { %2603 = vtanh.f32 %v3176_v29 }
 0x4c5   :  { %v2602_v30 = vpop.eup %2601 }
 0x4c6   :  { %606 = vrot.lane.b32.xlu0 %v2602_v30, %s2885_s13 }
 0x4c8   :  { %v2604_v31 = vpop.eup %2603 }
 0x4c9   :  { %582 = vrot.lane.b32.xlu1 %v2604_v31, %s2885_s13 }
 0x538   :  { %v607_v23 = vpop.permute.xlu0 %606 }
 0x539   :  { %v609_v33 = vmul.f32 %v2598_v15, %v607_v23 }
 0x53b   :  { %611 = vrot.lane.b32.xlu0 %v609_v33, %s2886_s29  ;;  %v583_v36 = vpop.permute.xlu1 %582 }
 0x53c   :  { %v585_v37 = vmul.f32 %v2600_v20, %v583_v36 }
 0x53e   :  { %687 = vrot.lane.b32.xlu1 %v585_v37, %s2886_s29 }
 0x53f   :  { %332 = vperm.xlu0 %2575, %v3059_v2  }
 0x543   :  { %2576 = vset.pattern.permute.xlu0 %v2892_v16 }
 0x5ad   :  { %v612_v38 = vpop.permute.xlu0 %611 }
 0x5ae   :  { %2183 = vmatmul.mubr.msk.f32.vlgmr.msra.gmra.mrb[4].mxu0 %vm229_vm2, %v612_v38 }
 0x5af   :  { %2455 = vmatpush1.bf16.msra.mxu0 %v3110_v35  ;;  %881 = vmatprep.mubr.f32.mxu0 %v2889_v19 }
 0x5b0   :  { %v688_v39 = vpop.permute.xlu1 %687  ;;  %2457 = vmatprep.subr.bf16.mxu0 %v3114_v40 }
 0x5b1   :  { %2314 = vmatmul.mubr.msk.f32.vlgmr.msra.gmra.mrb[4].mxu1 %vm229_vm2, %v688_v39 }
 0x5b2   :  { %2462 = vmatpush3.bf16.msra.mxu1 %v3130_v47  ;;  %2324 = vmatprep.mubr.msk.f32.mxu1 %vm2888_vm0, %v2889_v19 }
 0x5b3   :  { %2459 = vmatpush1.bf16.msra.mxu0 %v3117_v41  ;;  %2463 = vmatprep.subr.bf16.mxu1 %v2887_v17 }
 0x5b4   :  { %2467 = vmatprep.subr.bf16.mxu0 %v3108_v34 }
 0x5b6   :  { %2465 = vmatpush3.bf16.msra.mxu1 %v3140_v52 }
 0x5b7   :  { %2474 = vmatprep.subr.bf16.mxu1 %v2887_v17 }
 0x5be   :  { %v333_v42 = vpop.permute.xlu0 %332 }
 0x5bf   :  { %v335_v43 = vmul.f32 %v3065_v3, %v333_v42 }
 0x5c1   :  { %v336_v44 = vadd.f32 %v3070_v4, %v335_v43 }
 0x681   :  { %v681_v45 = vpop.f32.mrb[4].mxu0 }
 0x682   :  { %v763_v46 = vadd.f32 %v681_v45, %v336_v44  ;;  %v683_v48 = vpop.f32.mrb[5].mxu0 }
 0x684   :  { %2605 = vtanh.f32 %v763_v46  ;;  %v757_v49 = vpop.f32.mrb[4].mxu1  ;;  %v2186_v56 = vmul.f32 -1.442695, %v763_v46 }
 0x685   :  { %v761_v50 = vadd.f32 %v757_v49, %v683_v48  ;;  %v2315_v51 = vpop.f32.mrb[5].mxu1 }
 0x687   :  { %v762_v53 = vadd.f32 %v3165_v0, %v761_v50 }
 0x689   :  { %2607 = vtanh.f32 %v762_v53  ;;  %v2185_v57 = vmul.f32 -1.442695, %v762_v53 }
 0x68a   :  { %2609 = vpow2.f32 %v2186_v56 }
 0x68b   :  { %2611 = vpow2.f32 %v2185_v57 }
 0x68e   :  { %v2606_v54 = vpop.eup %2605 }
 0x68f   :  { %797 = vrot.lane.b32.xlu1 %v2606_v54, %s2885_s13 }
 0x693   :  { %v2608_v55 = vpop.eup %2607 }
 0x694   :  { %773 = vrot.lane.b32.xlu1 %v2608_v55, %s2885_s13  ;;  %v2610_v58 = vpop.eup %2609 }
 0x695   :  { %v791_v59 = vadd.f32 1.0, %v2610_v58  ;;  %v2612_v60 = vpop.eup %2611 }
 0x696   :  { %v767_v61 = vadd.f32 1.0, %v2612_v60 }
 0x697   :  { %2613 = vrcp.f32 %v791_v59 }
 0x698   :  { %2615 = vrcp.f32 %v767_v61 }
 0x6a1   :  { %v2614_v62 = vpop.eup %2613 }
 0x6a2   :  { %v2616_v5 = vpop.eup %2615  ;;  %v795_v8 = vmul.f32 %v2614_v62, %v3173_v26 }
 0x6a3   :  { %v771_v11 = vmul.f32 %v2616_v5, %v3176_v29 }
 0x701   :  { %v798_v63 = vpop.permute.xlu1 %797 }
 0x702   :  { %v800_v1 = vmul.f32 %v2614_v62, %v798_v63  ;;  %v2893_v63 = vmov 4  }
 0x704   :  { %802 = vrot.lane.b32.xlu0 %v800_v1, %s2886_s29 }
 0x706   :  { %v774_v6 = vpop.permute.xlu1 %773 }
 0x707   :  { %v776_v7 = vmul.f32 %v2616_v5, %v774_v6 }
 0x709   :  { %778 = vrot.lane.b32.xlu1 %v776_v7, %s2886_s29 }
 0x776   :  { %v803_v9 = vpop.permute.xlu0 %802 }
 0x777   :  { %v3205_v10 = vadd.f32 %v803_v9, %v795_v8 }
 0x779   :  { %2617 = vtanh.f32 %v3205_v10 }
 0x77b   :  { %v779_v12 = vpop.permute.xlu1 %778 }
 0x77c   :  { %v3209_v13 = vadd.f32 %v779_v12, %v771_v11 }
 0x77e   :  { %2619 = vtanh.f32 %v3209_v13 }
 0x783   :  { %v2618_v14 = vpop.eup %2617 }
 0x784   :  { %808 = vrot.lane.b32.xlu0 %v2618_v14, %s2885_s13 }
 0x788   :  { %v2620_v15 = vpop.eup %2619 }
 0x789   :  { %784 = vrot.lane.b32.xlu1 %v2620_v15, %s2885_s13 }
 0x7f6   :  { %v809_v18 = vpop.permute.xlu0 %808 }
 0x7f7   :  { %v811_v20 = vmul.f32 %v2614_v62, %v809_v18 }
 0x7f9   :  { %813 = vrot.lane.b32.xlu0 %v811_v20, %s2886_s29 }
 0x7fb   :  { %v785_v21 = vpop.permute.xlu1 %784 }
 0x7fc   :  { %v787_v22 = vmul.f32 %v2616_v5, %v785_v21 }
 0x7fd   :  { %338 = vperm.xlu0 %2576, %v3059_v2  }
 0x7fe   :  { %889 = vrot.lane.b32.xlu1 %v787_v22, %s2886_s29 }
 0x801   :  { %2577 = vset.pattern.permute.xlu0 %v2893_v63 }
 0x86b   :  { %v814_v24 = vpop.permute.xlu0 %813 }
 0x86c   :  { %2187 = vmatmul.mubr.msk.f32.vlgmr.msra.gmra.mrb[6].mxu0 %vm229_vm2, %v814_v24 }
 0x86d   :  { %2469 = vmatpush1.bf16.msra.mxu0 %v3110_v35  ;;  %1083 = vmatprep.mubr.f32.mxu0 %v2889_v19 }
 0x86e   :  { %2471 = vmatprep.subr.bf16.mxu0 %v3114_v40 }
 0x870   :  { %v890_v25 = vpop.permute.xlu1 %889 }
 0x871   :  { %2325 = vmatmul.mubr.msk.f32.vlgmr.msra.gmra.mrb[6].mxu1 %vm229_vm2, %v890_v25  ;;  %2473 = vmatpush1.bf16.msra.mxu0 %v3117_v41 }
 0x872   :  { %2476 = vmatpush3.bf16.msra.mxu1 %v3130_v47  ;;  %2335 = vmatprep.mubr.msk.f32.mxu1 %vm2888_vm0, %v2889_v19 }
 0x873   :  { %2477 = vmatprep.subr.bf16.mxu1 %v2887_v17  ;;  %2481 = vmatprep.subr.bf16.mxu0 %v3108_v34 }
 0x876   :  { %2479 = vmatpush3.bf16.msra.mxu1 %v3140_v52 }
 0x877   :  { %2488 = vmatprep.subr.bf16.mxu1 %v2887_v17 }
 0x87c   :  { %v339_v26 = vpop.permute.xlu0 %338 }
 0x87d   :  { %v341_v27 = vmul.f32 %v3065_v3, %v339_v26 }
 0x87f   :  { %v342_v28 = vadd.f32 %v3070_v4, %v341_v27 }
 0x93f   :  { %v883_v29 = vpop.f32.mrb[6].mxu0 }
 0x940   :  { %v965_v30 = vadd.f32 %v883_v29, %v342_v28  ;;  %v885_v31 = vpop.f32.mrb[7].mxu0 }
 0x942   :  { %2621 = vtanh.f32 %v965_v30  ;;  %v2190_v39 = vmul.f32 -1.442695, %v965_v30 }
 0x944   :  { %v959_v32 = vpop.f32.mrb[6].mxu1 }
 0x945   :  { %v963_v23 = vadd.f32 %v959_v32, %v885_v31  ;;  %v2326_v33 = vpop.f32.mrb[7].mxu1 }
 0x947   :  { %v964_v36 = vadd.f32 %v3165_v0, %v963_v23 }
 0x949   :  { %2623 = vtanh.f32 %v964_v36  ;;  %v2189_v42 = vmul.f32 -1.442695, %v964_v36 }
 0x94a   :  { %2625 = vpow2.f32 %v2190_v39 }
 0x94b   :  { %2627 = vpow2.f32 %v2189_v42 }
 0x94c   :  { %v2622_v37 = vpop.eup %2621 }
 0x94d   :  { %999 = vrot.lane.b32.xlu1 %v2622_v37, %s2885_s13 }
 0x953   :  { %v2624_v38 = vpop.eup %2623 }
 0x954   :  { %975 = vrot.lane.b32.xlu1 %v2624_v38, %s2885_s13  ;;  %v2626_v43 = vpop.eup %2625 }
 0x955   :  { %v993_v44 = vadd.f32 1.0, %v2626_v43  ;;  %v2628_v45 = vpop.eup %2627 }
 0x956   :  { %v969_v46 = vadd.f32 1.0, %v2628_v45 }
 0x957   :  { %2629 = vrcp.f32 %v993_v44 }
 0x958   :  { %2631 = vrcp.f32 %v969_v46 }
 0x961   :  { %v2630_v48 = vpop.eup %2629 }
 0x962   :  { %v2632_v51 = vpop.eup %2631  ;;  %v997_v55 = vmul.f32 %v2630_v48, %v3205_v10 }
 0x963   :  { %v973_v58 = vmul.f32 %v2632_v51, %v3209_v13 }
 0x9bf   :  { %v1000_v49 = vpop.permute.xlu1 %999 }
 0x9c0   :  { %v1002_v50 = vmul.f32 %v2630_v48, %v1000_v49 }
 0x9c2   :  { %1004 = vrot.lane.b32.xlu0 %v1002_v50, %s2886_s29  ;;  %v2894_v50 = vmov 5  }
 0x9c6   :  { %v976_v53 = vpop.permute.xlu1 %975 }
 0x9c7   :  { %v978_v54 = vmul.f32 %v2632_v51, %v976_v53 }
 0x9c9   :  { %980 = vrot.lane.b32.xlu1 %v978_v54, %s2886_s29 }
 0xa34   :  { %v1005_v56 = vpop.permute.xlu0 %1004 }
 0xa35   :  { %v3238_v57 = vadd.f32 %v1005_v56, %v997_v55 }
 0xa37   :  { %2633 = vtanh.f32 %v3238_v57 }
 0xa3b   :  { %v981_v59 = vpop.permute.xlu1 %980 }
 0xa3c   :  { %v3242_v60 = vadd.f32 %v981_v59, %v973_v58 }
 0xa3e   :  { %2635 = vtanh.f32 %v3242_v60 }
 0xa41   :  { %v2634_v61 = vpop.eup %2633 }
 0xa42   :  { %1010 = vrot.lane.b32.xlu0 %v2634_v61, %s2885_s13 }
 0xa48   :  { %v2636_v62 = vpop.eup %2635 }
 0xa49   :  { %986 = vrot.lane.b32.xlu1 %v2636_v62, %s2885_s13 }
 0xab4   :  { %v1011_v1 = vpop.permute.xlu0 %1010 }
 0xab5   :  { %v1013_v5 = vmul.f32 %v2630_v48, %v1011_v1 }
 0xab7   :  { %1015 = vrot.lane.b32.xlu0 %v1013_v5, %s2886_s29 }
 0xabb   :  { %v987_v6 = vpop.permute.xlu1 %986  ;;  %344 = vperm.xlu0 %2577, %v3059_v2  }
 0xabc   :  { %v989_v7 = vmul.f32 %v2632_v51, %v987_v6 }
 0xabe   :  { %1091 = vrot.lane.b32.xlu1 %v989_v7, %s2886_s29 }
 0xabf   :  { %2578 = vset.pattern.permute.xlu0 %v2894_v50 }
 0xb29   :  { %v1016_v8 = vpop.permute.xlu0 %1015 }
 0xb2a   :  { %2191 = vmatmul.mubr.msk.f32.vlgmr.msra.gmra.mrb[8].mxu0 %vm229_vm2, %v1016_v8 }
 0xb2b   :  { %2483 = vmatpush1.bf16.msra.mxu0 %v3110_v35  ;;  %1285 = vmatprep.mubr.f32.mxu0 %v2889_v19 }
 0xb2c   :  { %2485 = vmatprep.subr.bf16.mxu0 %v3114_v40 }
 0xb2f   :  { %2487 = vmatpush1.bf16.msra.mxu0 %v3117_v41 }
 0xb30   :  { %v1092_v9 = vpop.permute.xlu1 %1091  ;;  %2495 = vmatprep.subr.bf16.mxu0 %v3108_v34 }
 0xb31   :  { %2336 = vmatmul.mubr.msk.f32.vlgmr.msra.gmra.mrb[8].mxu1 %vm229_vm2, %v1092_v9 }
 0xb32   :  { %2490 = vmatpush3.bf16.msra.mxu1 %v3130_v47  ;;  %2346 = vmatprep.mubr.msk.f32.mxu1 %vm2888_vm0, %v2889_v19 }
 0xb33   :  { %2491 = vmatprep.subr.bf16.mxu1 %v2887_v17 }
 0xb36   :  { %2493 = vmatpush3.bf16.msra.mxu1 %v3140_v52 }
 0xb37   :  { %2502 = vmatprep.subr.bf16.mxu1 %v2887_v17 }
 0xb3a   :  { %v345_v10 = vpop.permute.xlu0 %344 }
 0xb3b   :  { %v347_v11 = vmul.f32 %v3065_v3, %v345_v10 }
 0xb3d   :  { %v348_v12 = vadd.f32 %v3070_v4, %v347_v11 }
 0xbfd   :  { %v1085_v13 = vpop.f32.mrb[8].mxu0 }
 0xbfe   :  { %v1167_v14 = vadd.f32 %v1085_v13, %v348_v12  ;;  %v1087_v15 = vpop.f32.mrb[9].mxu0 }
 0xc00   :  { %2637 = vtanh.f32 %v1167_v14  ;;  %v2194_v25 = vmul.f32 -1.442695, %v1167_v14 }
 0xc04   :  { %v1161_v16 = vpop.f32.mrb[8].mxu1 }
 0xc05   :  { %v1165_v18 = vadd.f32 %v1161_v16, %v1087_v15  ;;  %v2337_v20 = vpop.f32.mrb[9].mxu1 }
 0xc07   :  { %v1166_v21 = vadd.f32 %v3165_v0, %v1165_v18 }
 0xc09   :  { %2639 = vtanh.f32 %v1166_v21  ;;  %v2193_v26 = vmul.f32 -1.442695, %v1166_v21 }
 0xc0a   :  { %v2638_v22 = vpop.eup %2637  ;;  %2641 = vpow2.f32 %v2194_v25 }
 0xc0b   :  { %1201 = vrot.lane.b32.xlu1 %v2638_v22, %s2885_s13  ;;  %2643 = vpow2.f32 %v2193_v26 }
 0xc13   :  { %v2640_v24 = vpop.eup %2639 }
 0xc14   :  { %1177 = vrot.lane.b32.xlu1 %v2640_v24, %s2885_s13  ;;  %v2642_v27 = vpop.eup %2641 }
 0xc15   :  { %v1195_v28 = vadd.f32 1.0, %v2642_v27  ;;  %v2644_v29 = vpop.eup %2643 }
 0xc16   :  { %v1171_v30 = vadd.f32 1.0, %v2644_v29 }
 0xc17   :  { %2645 = vrcp.f32 %v1195_v28 }
 0xc18   :  { %2647 = vrcp.f32 %v1171_v30 }
 0xc21   :  { %v2646_v31 = vpop.eup %2645 }
 0xc22   :  { %v2648_v33 = vpop.eup %2647  ;;  %v1199_v38 = vmul.f32 %v2646_v31, %v3238_v57 }
 0xc23   :  { %v1175_v43 = vmul.f32 %v2648_v33, %v3242_v60 }
 0xc7d   :  { %v1202_v32 = vpop.permute.xlu1 %1201 }
 0xc7e   :  { %v1204_v23 = vmul.f32 %v2646_v31, %v1202_v32 }
 0xc80   :  { %1206 = vrot.lane.b32.xlu0 %v1204_v23, %s2886_s29 }
 0xc86   :  { %v1178_v36 = vpop.permute.xlu1 %1177 }
 0xc87   :  { %v1180_v37 = vmul.f32 %v2648_v33, %v1178_v36 }
 0xc89   :  { %1182 = vrot.lane.b32.xlu1 %v1180_v37, %s2886_s29 }
 0xcf2   :  { %v1207_v39 = vpop.permute.xlu0 %1206 }
 0xcf3   :  { %v3271_v42 = vadd.f32 %v1207_v39, %v1199_v38 }
 0xcf5   :  { %2649 = vtanh.f32 %v3271_v42 }
 0xcfb   :  { %v1183_v44 = vpop.permute.xlu1 %1182 }
 0xcfc   :  { %v3275_v45 = vadd.f32 %v1183_v44, %v1175_v43 }
 0xcfe   :  { %2651 = vtanh.f32 %v3275_v45 }
 0xcff   :  { %v2650_v46 = vpop.eup %2649 }
 0xd00   :  { %1212 = vrot.lane.b32.xlu0 %v2650_v46, %s2885_s13 }
 0xd08   :  { %v2652_v48 = vpop.eup %2651 }
 0xd09   :  { %1188 = vrot.lane.b32.xlu1 %v2652_v48, %s2885_s13 }
 0xd72   :  { %v1213_v49 = vpop.permute.xlu0 %1212 }
 0xd73   :  { %v1215_v51 = vmul.f32 %v2646_v31, %v1213_v49 }
 0xd75   :  { %1217 = vrot.lane.b32.xlu0 %v1215_v51, %s2886_s29 }
 0xd79   :  { %350 = vperm.xlu0 %2578, %v3059_v2  }
 0xd7b   :  { %v1189_v53 = vpop.permute.xlu1 %1188 }
 0xd7c   :  { %v1191_v54 = vmul.f32 %v2648_v33, %v1189_v53  ;;  %v2895_v33 = vmov 6  }
 0xd7d   :  { %2579 = vset.pattern.permute.xlu0 %v2895_v33 }
 0xd7e   :  { %1293 = vrot.lane.b32.xlu1 %v1191_v54, %s2886_s29 }
 0xde7   :  { %v1218_v55 = vpop.permute.xlu0 %1217 }
 0xde8   :  { %2195 = vmatmul.mubr.msk.f32.vlgmr.msra.gmra.mrb[10].mxu0 %vm229_vm2, %v1218_v55 }
 0xde9   :  { %2497 = vmatpush1.bf16.msra.mxu0 %v3110_v35  ;;  %1487 = vmatprep.mubr.f32.mxu0 %v2889_v19 }
 0xdea   :  { %2499 = vmatprep.subr.bf16.mxu0 %v3114_v40 }
 0xded   :  { %2501 = vmatpush1.bf16.msra.mxu0 %v3117_v41 }
 0xdee   :  { %2509 = vmatprep.subr.bf16.mxu0 %v3108_v34 }
 0xdf0   :  { %v1294_v56 = vpop.permute.xlu1 %1293 }
 0xdf1   :  { %2347 = vmatmul.mubr.msk.f32.vlgmr.msra.gmra.mrb[10].mxu1 %vm229_vm2, %v1294_v56 }
 0xdf2   :  { %2504 = vmatpush3.bf16.msra.mxu1 %v3130_v47  ;;  %2357 = vmatprep.mubr.msk.f32.mxu1 %vm2888_vm0, %v2889_v19 }
 0xdf3   :  { %2505 = vmatprep.subr.bf16.mxu1 %v2887_v17 }
 0xdf6   :  { %2507 = vmatpush3.bf16.msra.mxu1 %v3140_v52 }
 0xdf7   :  { %2516 = vmatprep.subr.bf16.mxu1 %v2887_v17 }
 0xdf8   :  { %v351_v57 = vpop.permute.xlu0 %350 }
 0xdf9   :  { %v353_v58 = vmul.f32 %v3065_v3, %v351_v57 }
 0xdfb   :  { %v354_v59 = vadd.f32 %v3070_v4, %v353_v58 }
 0xebb   :  { %v1287_v60 = vpop.f32.mrb[10].mxu0 }
 0xebc   :  { %v1369_v61 = vadd.f32 %v1287_v60, %v354_v59  ;;  %v1289_v62 = vpop.f32.mrb[11].mxu0 }
 0xebe   :  { %2653 = vtanh.f32 %v1369_v61  ;;  %v2198_v9 = vmul.f32 -1.442695, %v1369_v61 }
 0xec4   :  { %v1363_v63 = vpop.f32.mrb[10].mxu1 }
 0xec5   :  { %v1367_v1 = vadd.f32 %v1363_v63, %v1289_v62  ;;  %v2348_v5 = vpop.f32.mrb[11].mxu1 }
 0xec7   :  { %v1368_v6 = vadd.f32 %v3165_v0, %v1367_v1 }
 0xec8   :  { %v2654_v7 = vpop.eup %2653 }
 0xec9   :  { %2655 = vtanh.f32 %v1368_v6  ;;  %1403 = vrot.lane.b32.xlu1 %v2654_v7, %s2885_s13  ;;  %v2197_v10 = vmul.f32 -1.442695, %v1368_v6 }
 0xeca   :  { %2657 = vpow2.f32 %v2198_v9 }
 0xecb   :  { %2659 = vpow2.f32 %v2197_v10 }
 0xed3   :  { %v2656_v8 = vpop.eup %2655 }
 0xed4   :  { %1379 = vrot.lane.b32.xlu1 %v2656_v8, %s2885_s13  ;;  %v2658_v11 = vpop.eup %2657 }
 0xed5   :  { %v1397_v12 = vadd.f32 1.0, %v2658_v11  ;;  %v2660_v13 = vpop.eup %2659 }
 0xed6   :  { %v1373_v14 = vadd.f32 1.0, %v2660_v13 }
 0xed7   :  { %2661 = vrcp.f32 %v1397_v12 }
 0xed8   :  { %2663 = vrcp.f32 %v1373_v14  ;;  %v2896_v14 = vmov 7  }
 0xee1   :  { %v2662_v15 = vpop.eup %2661 }
 0xee2   :  { %v2664_v20 = vpop.eup %2663  ;;  %v1401_v24 = vmul.f32 %v2662_v15, %v3271_v42 }
 0xee3   :  { %v1377_v27 = vmul.f32 %v2664_v20, %v3275_v45 }
 0xf3b   :  { %v1404_v16 = vpop.permute.xlu1 %1403 }
 0xf3c   :  { %v1406_v18 = vmul.f32 %v2662_v15, %v1404_v16 }
 0xf3e   :  { %1408 = vrot.lane.b32.xlu0 %v1406_v18, %s2886_s29 }
 0xf46   :  { %v1380_v21 = vpop.permute.xlu1 %1379 }
 0xf47   :  { %v1382_v22 = vmul.f32 %v2664_v20, %v1380_v21 }
 0xf49   :  { %1384 = vrot.lane.b32.xlu1 %v1382_v22, %s2886_s29 }
 0xfb0   :  { %v1409_v25 = vpop.permute.xlu0 %1408 }
 0xfb1   :  { %v3304_v26 = vadd.f32 %v1409_v25, %v1401_v24 }
 0xfb3   :  { %2665 = vtanh.f32 %v3304_v26 }
 0xfbb   :  { %v1385_v28 = vpop.permute.xlu1 %1384 }
 0xfbc   :  { %v3308_v29 = vadd.f32 %v1385_v28, %v1377_v27 }
 0xfbd   :  { %v2666_v30 = vpop.eup %2665 }
 0xfbe   :  { %2667 = vtanh.f32 %v3308_v29  ;;  %1414 = vrot.lane.b32.xlu0 %v2666_v30, %s2885_s13 }
 0xfc8   :  { %v2668_v31 = vpop.eup %2667 }
 0xfc9   :  { %1390 = vrot.lane.b32.xlu1 %v2668_v31, %s2885_s13 }
0x1030   :  { %v1415_v32 = vpop.permute.xlu0 %1414 }
0x1031   :  { %v1417_v23 = vmul.f32 %v2662_v15, %v1415_v32 }
0x1033   :  { %1419 = vrot.lane.b32.xlu0 %v1417_v23, %s2886_s29 }
0x1037   :  { %356 = vperm.xlu0 %2579, %v3059_v2  }
0x103b   :  { %v1391_v36 = vpop.permute.xlu1 %1390  ;;  %2580 = vset.pattern.permute.xlu0 %v2896_v14  ;;  %v1999_v14 = vld [vmem:[#allocation11 + $0x10] sm:$0xff] }
0x103c   :  { %v1393_v37 = vmul.f32 %v2664_v20, %v1391_v36 }
0x103e   :  { %1495 = vrot.lane.b32.xlu1 %v1393_v37, %s2886_s29 }
0x10a5   :  { %v1420_v38 = vpop.permute.xlu0 %1419 }
0x10a6   :  { %2199 = vmatmul.mubr.msk.f32.vlgmr.msra.gmra.mrb[12].mxu0 %vm229_vm2, %v1420_v38 }
0x10a7   :  { %2511 = vmatpush1.bf16.msra.mxu0 %v3110_v35  ;;  %1689 = vmatprep.mubr.f32.mxu0 %v2889_v19 }
0x10a8   :  { %2513 = vmatprep.subr.bf16.mxu0 %v3114_v40 }
0x10ab   :  { %2515 = vmatpush1.bf16.msra.mxu0 %v3117_v41 }
0x10ac   :  { %2522 = vmatprep.subr.bf16.mxu0 %v2887_v17 }
0x10b0   :  { %v1496_v39 = vpop.permute.xlu1 %1495 }
0x10b1   :  { %2358 = vmatmul.mubr.msk.f32.vlgmr.msra.gmra.mrb[12].mxu1 %vm229_vm2, %v1496_v39 }
0x10b2   :  { %2518 = vmatpush3.bf16.msra.mxu1 %v3130_v47  ;;  %2368 = vmatprep.mubr.msk.f32.mxu1 %vm2888_vm0, %v2889_v19 }
0x10b3   :  { %2519 = vmatprep.subr.bf16.mxu1 %v2887_v17 }
0x10b6   :  { %2521 = vmatpush3.bf16.msra.mxu1 %v3140_v52  ;;  %v357_v35 = vpop.permute.xlu0 %356 }
0x10b7   :  { %2528 = vmatprep.subr.bf16.mxu1 %v2887_v17  ;;  %v359_v42 = vmul.f32 %v3065_v3, %v357_v35 }
0x10b9   :  { %v360_v41 = vadd.f32 %v3070_v4, %v359_v42 }
0x1179   :  { %v1489_v43 = vpop.f32.mrb[12].mxu0 }
0x117a   :  { %v1571_v44 = vadd.f32 %v1489_v43, %v360_v41  ;;  %v1491_v45 = vpop.f32.mrb[13].mxu0 }
0x117c   :  { %2669 = vtanh.f32 %v1571_v44  ;;  %v2202_v54 = vmul.f32 -1.442695, %v1571_v44 }
0x1184   :  { %v1565_v46 = vpop.f32.mrb[12].mxu1 }
0x1185   :  { %v1569_v48 = vadd.f32 %v1565_v46, %v1491_v45  ;;  %v2359_v49 = vpop.f32.mrb[13].mxu1 }
0x1186   :  { %v2670_v50 = vpop.eup %2669 }
0x1187   :  { %v1570_v51 = vadd.f32 %v3165_v0, %v1569_v48  ;;  %1605 = vrot.lane.b32.xlu1 %v2670_v50, %s2885_s13 }
0x1189   :  { %2671 = vtanh.f32 %v1570_v51  ;;  %v2201_v3 = vmul.f32 -1.442695, %v1570_v51 }
0x118a   :  { %2673 = vpow2.f32 %v2202_v54 }
0x118b   :  { %2675 = vpow2.f32 %v2201_v3 }
0x1193   :  { %v2672_v53 = vpop.eup %2671 }
0x1194   :  { %1581 = vrot.lane.b32.xlu1 %v2672_v53, %s2885_s13  ;;  %v2674_v4 = vpop.eup %2673 }
0x1195   :  { %v1599_v55 = vadd.f32 1.0, %v2674_v4  ;;  %v2676_v56 = vpop.eup %2675 }
0x1196   :  { %v1575_v57 = vadd.f32 1.0, %v2676_v56 }
0x1197   :  { %2677 = vrcp.f32 %v1599_v55 }
0x1198   :  { %2679 = vrcp.f32 %v1575_v57 }
0x11a1   :  { %v2678_v58 = vpop.eup %2677 }
0x11a2   :  { %v2680_v61 = vpop.eup %2679  ;;  %v1603_v1 = vmul.f32 %v2678_v58, %v3304_v26  ;;  %v2710_v26 = vld [vmem:[%s3413_s3] ss:$0 sm:$0xff] }
0x11a3   :  { %v1579_v7 = vmul.f32 %v2680_v61, %v3308_v29 }
0x11f9   :  { %v1606_v59 = vpop.permute.xlu1 %1605 }
0x11fa   :  { %v1608_v60 = vmul.f32 %v2678_v58, %v1606_v59 }
0x11fc   :  { %1610 = vrot.lane.b32.xlu0 %v1608_v60, %s2886_s29 }
0x1206   :  { %v1582_v62 = vpop.permute.xlu1 %1581 }
0x1207   :  { %v1584_v63 = vmul.f32 %v2680_v61, %v1582_v62 }
0x1209   :  { %1586 = vrot.lane.b32.xlu1 %v1584_v63, %s2886_s29 }
0x126e   :  { %v1611_v5 = vpop.permute.xlu0 %1610 }
0x126f   :  { %v3337_v6 = vadd.f32 %v1611_v5, %v1603_v1 }
0x1271   :  { %2681 = vtanh.f32 %v3337_v6 }
0x127b   :  { %v2682_v8 = vpop.eup %2681  ;;  %v1587_v9 = vpop.permute.xlu1 %1586 }
0x127c   :  { %v3341_v10 = vadd.f32 %v1587_v9, %v1579_v7  ;;  %1616 = vrot.lane.b32.xlu0 %v2682_v8, %s2885_s13 }
0x127e   :  { %2683 = vtanh.f32 %v3341_v10 }
0x1288   :  { %v2684_v11 = vpop.eup %2683 }
0x1289   :  { %1592 = vrot.lane.b32.xlu1 %v2684_v11, %s2885_s13 }
0x12ee   :  { %v1617_v12 = vpop.permute.xlu0 %1616 }
0x12ef   :  { %v1619_v13 = vmul.f32 %v2678_v58, %v1617_v12 }
0x12f1   :  { %1621 = vrot.lane.b32.xlu0 %v1619_v13, %s2886_s29  ;;  %v1997_v13 = vld [vmem:[#allocation11] sm:$0xff] }
0x12f5   :  { %362 = vperm.xlu0 %2580, %v3059_v2  }
0x12fb   :  { %v1593_v15 = vpop.permute.xlu1 %1592 }
0x12fc   :  { %v1595_v16 = vmul.f32 %v2680_v61, %v1593_v15 }
0x12fe   :  { %1697 = vrot.lane.b32.xlu1 %v1595_v16, %s2886_s29  ;;  %v2000_v16 = vld [vmem:[#allocation11 + $0x18] sm:$0xff] }
0x1363   :  { %v1622_v18 = vpop.permute.xlu0 %1621 }
0x1364   :  { %2203 = vmatmul.mubr.msk.f32.vlgmr.msra.gmra.mrb[14].mxu0 %vm229_vm2, %v1622_v18  ;;  %v2538_v18 = vpack.c.bf16 %v2000_v16, %v1999_v14 }
0x1365   :  { %2524 = vmatpush3.bf16.msra.mxu0 %v3130_v47  ;;  %2379 = vmatprep.mubr.msk.f32.mxu0 %vm2888_vm0, %v2889_v19 }
0x1366   :  { %2525 = vmatprep.subr.bf16.mxu0 %v2887_v17 }
0x1369   :  { %2527 = vmatpush3.bf16.msra.mxu0 %v3140_v52  ;;  %v2709_v52 = vld [vmem:[%s3412_s2] ss:$0 sm:$0xff] }
0x136a   :  { %2540 = vmatprep.subr.bf16.mxu0 %v2887_v17 }
0x1370   :  { %v1698_v20 = vpop.permute.xlu1 %1697 }
0x1371   :  { %2369 = vmatmul.mubr.msk.f32.vlgmr.msra.gmra.mrb[14].mxu1 %vm229_vm2, %v1698_v20 }
0x1372   :  { %2530 = vmatpush3.bf16.msra.mxu1 %v3108_v34  ;;  %2390 = vmatprep.mubr.msk.f32.mxu1 %vm2888_vm0, %v2889_v19 }
0x1373   :  { %2531 = vmatprep.subr.bf16.mxu1 %v2887_v17 }
0x1374   :  { %v363_v21 = vpop.permute.xlu0 %362 }
0x1375   :  { %v365_v22 = vmul.f32 %v2709_v52, %v363_v21 }
0x1376   :  { %2533 = vmatpush3.bf16.msra.mxu1 %v3114_v40 }
0x1377   :  { %2534 = vmatprep.subr.bf16.mxu1 %v2887_v17  ;;  %v366_v27 = vadd.f32 %v2710_v26, %v365_v22 }
0x1437   :  { %v1691_v2 = vpop.f32.mrb[14].mxu0 }
0x1438   :  { %v1693_v47 = vpop.f32.mrb[15].mxu0  ;;  %v1773_v28 = vadd.f32 %v1691_v2, %v366_v27  ;;  %v2077_v2 = vld [vmem:[%s3422_s12] sm:$0xff]  ;;  %v2174_v27 = vld [vmem:[#allocation13] ss:$0 sm:$0xff] }
0x143a   :  { %v2206_v32 = vmul.f32 -1.442695, %v1773_v28 }
0x1444   :  { %v1767_v24 = vpop.f32.mrb[14].mxu1 }
0x1445   :  { %v1771_v25 = vadd.f32 %v1767_v24, %v1693_v47  ;;  %v2370_v34 = vpop.f32.mrb[15].mxu1  ;;  %v2078_v47 = vld [vmem:[%s3422_s12 + $0x8] sm:$0xff] }
0x1446   :  { %v2541_v21 = vpack.c.bf16 %v2078_v47, %v2077_v2  ;;  %v2080_v34 = vld [vmem:[%s3422_s12 + $0x18] sm:$0xff] }
0x1447   :  { %v1772_v40 = vadd.f32 %v3165_v0, %v1771_v25  ;;  %v2079_v25 = vld [vmem:[%s3422_s12 + $0x10] sm:$0xff] }
0x1448   :  { %v2544_v26 = vpack.c.bf16 %v2080_v34, %v2079_v25 }
0x1449   :  { %2685 = vtanh.f32 %v1772_v40  ;;  %v2205_v31 = vmul.f32 -1.442695, %v1772_v40 }
0x144a   :  { %2687 = vtanh.f32 %v1773_v28 }
0x144b   :  { %2689 = vpow2.f32 %v2205_v31 }
0x144c   :  { %2691 = vpow2.f32 %v2206_v32 }
0x1453   :  { %v2686_v29 = vpop.eup %2685 }
0x1454   :  { %1783 = vrot.lane.b32.xlu1 %v2686_v29, %s2885_s13  ;;  %v2688_v30 = vpop.eup %2687 }
0x1455   :  { %v2690_v23 = vpop.eup %2689 }
0x1456   :  { %v1777_v33 = vadd.f32 1.0, %v2690_v23  ;;  %v2692_v36 = vpop.eup %2691 }
0x1457   :  { %v1801_v37 = vadd.f32 1.0, %v2692_v36 }
0x1458   :  { %1807 = vrot.lane.b32.xlu1 %v2688_v30, %s2885_s13  ;;  %2693 = vrcp.f32 %v1777_v33  ;;  %v2211_v30 = vld [vmem:[#allocation2] ss:$0 sm:$0xff] }
0x1459   :  { %2695 = vrcp.f32 %v1801_v37 }
0x1462   :  { %v2694_v38 = vpop.eup %2693 }
0x1463   :  { %v2696_v42 = vpop.eup %2695  ;;  %v1781_v44 = vmul.f32 %v2694_v38, %v3341_v10 }
0x1464   :  { %v1805_v48 = vmul.f32 %v2696_v42, %v3337_v6 }
0x14c6   :  { %v1784_v39 = vpop.permute.xlu1 %1783 }
0x14c7   :  { %v1786_v35 = vmul.f32 %v2694_v38, %v1784_v39 }
0x14c9   :  { %1788 = vrot.lane.b32.xlu0 %v1786_v35, %s2886_s29 }
0x14ca   :  { %v1808_v41 = vpop.permute.xlu1 %1807 }
0x14cb   :  { %v1810_v43 = vmul.f32 %v2696_v42, %v1808_v41 }
0x14cd   :  { %1812 = vrot.lane.b32.xlu1 %v1810_v43, %s2886_s29 }
0x153b   :  { %v1789_v45 = vpop.permute.xlu0 %1788 }
0x153c   :  { %v1791_v46 = vadd.f32 %v1789_v45, %v1781_v44 }
0x153e   :  { %2697 = vtanh.f32 %v1791_v46 }
0x153f   :  { %v1813_v49 = vpop.permute.xlu1 %1812 }
0x1540   :  { %v1815_v50 = vadd.f32 %v1813_v49, %v1805_v48 }
0x1542   :  { %2699 = vtanh.f32 %v1815_v50 }
0x1548   :  { %v2698_v51 = vpop.eup %2697 }
0x1549   :  { %1794 = vrot.lane.b32.xlu0 %v2698_v51, %s2885_s13 }
0x154c   :  { %v2700_v53 = vpop.eup %2699 }
0x154d   :  { %1818 = vrot.lane.b32.xlu1 %v2700_v53, %s2885_s13 }
0x15bb   :  { %v1795_v54 = vpop.permute.xlu0 %1794 }
0x15bc   :  { %v1797_v3 = vmul.f32 %v2694_v38, %v1795_v54 }
0x15be   :  { %1823 = vrot.lane.b32.xlu0 %v1797_v3, %s2886_s29 }
0x15bf   :  { %v1819_v4 = vpop.permute.xlu1 %1818 }
0x15c0   :  { %v1821_v55 = vmul.f32 %v2696_v42, %v1819_v4 }
0x15c2   :  { %1898 = vrot.lane.b32.xlu1 %v1821_v55, %s2886_s29 }
0x1630   :  { %v1824_v56 = vpop.permute.xlu0 %1823 }
0x1631   :  { %2380 = vmatmul.mubr.msk.f32.vlgmr.msra.gmra.mrb[16].mxu0 %vm229_vm2, %v1824_v56 }
0x1632   :  { %2412 = vmatprep.mubr.msk.f32.mxu0 %vm2888_vm0, %v2889_v19  ;;  %2542 = vmatpush3.bf16.msra.mxu0 %v2541_v21 }
0x1633   :  { %2543 = vmatprep.subr.bf16.mxu0 %v2887_v17 }
0x1634   :  { %v1899_v57 = vpop.permute.xlu1 %1898 }
0x1635   :  { %2391 = vmatmul.mubr.msk.f32.vlgmr.msra.gmra.mrb[16].mxu1 %vm229_vm2, %v1899_v57 }
0x1636   :  { %2401 = vmatprep.mubr.msk.f32.mxu1 %vm2888_vm0, %v2889_v19  ;;  %2545 = vmatpush3.bf16.msra.mxu0 %v2544_v26 }
0x1704   :  { %v1893_v58 = vpop.f32.mrb[16].mxu0 }
0x1705   :  { %v2381_v59 = vpop.f32.mrb[17].mxu0 }
0x1708   :  { %v1968_v60 = vpop.f32.mrb[16].mxu1 }
0x1709   :  { %v1969_v61 = vadd.f32 %v1968_v60, %v1893_v58  ;;  %v2392_v62 = vpop.f32.mrb[17].mxu1 }
0x170b   :  { %v1972_v63 = vadd.f32 %v3165_v0, %v1969_v61  ;;  %v1998_v0 = vld [vmem:[#allocation11 + $0x8] sm:$0xff] }
0x170c   :  { %v2535_v15 = vpack.c.bf16 %v1998_v0, %v1997_v13 }
0x170d   :  { %2701 = vtanh.f32 %v1972_v63  ;;  %v2209_v5 = vmul.f32 -1.442695, %v1972_v63 }
0x170e   :  { %2536 = vmatpush3.bf16.msra.mxu1 %v2535_v15 }
0x170f   :  { %2703 = vpow2.f32 %v2209_v5  ;;  %2537 = vmatprep.subr.bf16.mxu1 %v2887_v17 }
0x1712   :  { %2539 = vmatpush3.bf16.msra.mxu1 %v2538_v18 }
0x1717   :  { %v2702_v1 = vpop.eup %2701 }
0x1718   :  { %1982 = vrot.lane.b32.xlu0 %v2702_v1, %s2885_s13 }
0x1719   :  { %v2704_v6 = vpop.eup %2703 }
0x171a   :  { %v1976_v7 = vadd.f32 1.0, %v2704_v6 }
0x171c   :  { %2705 = vrcp.f32 %v1976_v7 }
0x1726   :  { %v2706_v8 = vpop.eup %2705 }
0x1727   :  { %v1980_v19 = vmul.f32 %v2706_v8, %v1791_v46 }
0x178a   :  { %v1983_v9 = vpop.permute.xlu0 %1982 }
0x178b   :  { %v1985_v10 = vmul.f32 %v2706_v8, %v1983_v9 }
0x178d   :  { %1987 = vrot.lane.b32.xlu1 %v1985_v10, %s2886_s29 }
0x17ff   :  { %v1988_v11 = vpop.permute.xlu1 %1987 }
0x1800   :  { %v1990_v12 = vadd.f32 %v1988_v11, %v1980_v19 }
0x1802   :  { %2707 = vtanh.f32 %v1990_v12 }
0x180c   :  { %v2708_v20 = vpop.eup %2707 }
0x180d   :  { %1993 = vrot.lane.b32.xlu0 %v2708_v20, %s2885_s13 }
0x187f   :  { %v1994_v52 = vpop.permute.xlu0 %1993 }
0x1880   :  { %v1996_v22 = vmul.f32 %v2706_v8, %v1994_v52 }
0x1882   :  { %2002 = vrot.lane.b32.xlu1 %v1996_v22, %s2886_s29 }
0x18f4   :  { %v2003_v24 = vpop.permute.xlu1 %2002 }
0x18f5   :  { %2402 = vmatmul.mubr.msk.f32.vlgmr.msra.gmra.mrb[0].mxu1 %vm229_vm2, %v2003_v24 }
0x19c8   :  { %v2072_v40 = vpop.f32.mrb[0].mxu1 }
0x19c9   :  { %v2546_v17 = vadd.f32 %v2174_v27, %v2072_v40  ;;  %v2403_v28 = vpop.f32.mrb[1].mxu1 }
0x19cb   :  { %v2076_v29 = vmax.f32 %v2546_v17, 0.0 }
0x19cd   :  { %2413 = vmatmul.mubr.msk.f32.vlgmr.msra.gmra.mrb[18].mxu0 %vm229_vm2, %v2076_v29 }
0x1aa0   :  { %v2157_v31 = vpop.f32.mrb[18].mxu0 }
0x1aa1   :  { %v2158_v32 = vadd.f32 %v2211_v30, %v2157_v31  ;;  %v2414_v23 = vpop.f32.mrb[19].mxu0 }
0x1aa3   :  { %2163 = vst.msk [vmem:[%s3424_s14] sm:$0xff] %vm2162_vm3, %v2158_v32 }
0x1aa4   :  { %2168 = vsyncpa [#allocation4], 1 }
0x1aa5   :  { %2169 = vsyncpa [#allocation6], 1 }
0x1aa6   :  { %2170 = vsyncpa [#allocation9], 1 }
0x1aa7   :  { %2171 = vsyncpa [#allocation12], 1 }

</bundles_post_ra>
